<compile_context>
chip_gen: v7x
topology: tpu7x:2x2x1
jax: 0.10.0
libtpu: 0.0.40
codegen_flags: <defaults>
</compile_context>

<pallas_src>
import functools

import jax
import jax.numpy as jnp
from jax import lax
from jax.experimental import pallas as pl
from jax.experimental.pallas import tpu as pltpu

EPS = 1e-12  # F.normalize default eps


def _conloss_kernel(q_ref, kd_ref, k_ref, loss_ref, qn_ref, s_ref, m_ref, *,
                    inv_temperature, use_max, mxu_dtype, approx_recip):
    # q_ref / kd_ref : (1, C, TQ) blocks, resident across the key axis.
    # k_ref          : (1, C, TK) streaming key tile.
    # loss_ref       : (1, 1, 1, 1) per-(batch, q-tile) partial loss sum.
    # qn_ref         : (C, TQ) cached normalized & 1/T-scaled q tile (MXU dtype).
    # s_ref / m_ref  : (TQ, 1) running sum-of-exp / running max (f32).
    ki = pl.program_id(2)
    nk = pl.num_programs(2)
    inv_t = jnp.float32(inv_temperature)

    def l1_inv(x):
        # x: (C, TILE) f32 -> (1, TILE) reciprocal of the channel-wise L1 norm
        # (clamp_min at EPS, matching F.normalize(p=1, dim=-1) on the permuted
        # view).  The approx reciprocal runs on the otherwise-idle EUP slot.
        return pl.reciprocal(
            jnp.maximum(jnp.sum(jnp.abs(x), axis=0, keepdims=True), EPS),
            approx=approx_recip)

    @pl.when(ki == 0)
    def _init():
        # Normalize this q tile once per q-tile, fold 1/T into the same
        # multiply, and cache in MXU dtype for all key steps.
        q = q_ref[0].astype(jnp.float32)                         # (C, TQ)
        qn_ref[...] = (q * (l1_inv(q) * inv_t)).astype(mxu_dtype)
        s_ref[...] = jnp.zeros_like(s_ref)
        if use_max:
            m_ref[...] = jnp.full(m_ref.shape, -jnp.inf, dtype=m_ref.dtype)

    # Normalize the current key tile and contract over channels on the MXU.
    # Both operands stay in their stored (C, TILE) form — no explicit transpose.
    k = k_ref[0].astype(jnp.float32)                             # (C, TK)
    kn = (k * l1_inv(k)).astype(mxu_dtype)
    scores = lax.dot_general(
        qn_ref[...], kn,
        dimension_numbers=(((0,), (0,)), ((), ())),
        preferred_element_type=jnp.float32)                      # (TQ, TK) = <q_i,k_j>/T

    if use_max:
        # Fallback online softmax with a running max: only needed when the
        # temperature is so small that exp(1/T) would overflow f32.
        m_prev = m_ref[...]
        m_new = jnp.maximum(m_prev, jnp.max(scores, axis=-1, keepdims=True))
        s_ref[...] = (s_ref[...] * jnp.exp(m_prev - m_new)
                      + jnp.sum(jnp.exp(scores - m_new), axis=-1, keepdims=True))
        m_ref[...] = m_new
    else:
        # L1 normalization bounds |scores| <= 1/T, so for T >= ~0.015 the exp
        # cannot overflow f32 and the row-max pass (XLU) is skipped entirely.
        s_ref[...] += jnp.sum(jnp.exp(scores), axis=-1, keepdims=True)

    @pl.when(ki == nk - 1)
    def _finalize():
        # Positive logits <q_i, k_i>/T computed directly in f32 from the
        # diagonal-aligned k block — no (TQ, TK) diagonal masking.
        q = q_ref[0].astype(jnp.float32)
        kd = kd_ref[0].astype(jnp.float32)
        pos = jnp.sum((q * (l1_inv(q) * inv_t)) * (kd * l1_inv(kd)),
                      axis=0, keepdims=True)                     # (1, TQ)
        lse = jnp.log(s_ref[...])                                # (TQ, 1)
        if use_max:
            lse = lse + m_ref[...]
        # Cross entropy with target 0 summed over this tile:
        #   sum_i (lse_i - pos_i) = sum(lse) - sum(pos)
        # Only the tile sum is needed, so the (TQ,1)/(1,TQ) layouts never have
        # to be aligned elementwise.
        loss_ref[...] = jnp.reshape(jnp.sum(lse) - jnp.sum(pos), (1, 1, 1, 1))


def _pick_tile(S, tile):
    """Largest multiple of 128 <= `tile` that divides S; else the full extent."""
    if S % 128 != 0:
        # TODO(synk): for large S that is not a multiple of 128, pad + mask the
        # padded rows/cols to keep the tiled path; for now fall back to a single
        # full-extent tile (always correct, only scales like the untiled path).
        return S
    t = max(128, min(tile, S) - (min(tile, S) % 128))
    while S % t:
        t -= 128
    return t


def conloss_queue(feat_q, feat_k, temperature=0.07, *, tile=512,
                  mxu_dtype=jnp.bfloat16, approx_recip=True):
    """Pallas implementation of ConLoss_queue.forward. Inputs are NCHW."""
    assert feat_q.shape == feat_k.shape, (feat_q.shape, feat_k.shape)
    B, C, H, W = feat_q.shape
    S = H * W

    # Glue: (B, C, H, W) -> (B, C, S).  Pure reshape — no HBM transpose pass
    # and no dtype upcast (the kernel casts tiles to f32 internally).
    q = feat_q.reshape(B, C, S)
    k = feat_k.reshape(B, C, S)

    T = _pick_tile(S, tile)
    n_q = S // T
    n_k = S // T
    use_max = float(temperature) < 0.015  # below this, exp(1/T) risks f32 overflow

    kernel = functools.partial(
        _conloss_kernel,
        inv_temperature=1.0 / float(temperature),
        use_max=use_max,
        mxu_dtype=mxu_dtype,
        approx_recip=approx_recip,
    )

    # VMEM budget derived from the tile plan (v7x has only 64 MiB physical).
    in_bytes = q.dtype.itemsize
    mxu_bytes = jnp.dtype(mxu_dtype).itemsize
    est = (2 * 2 * C * T * in_bytes      # q + diag-k blocks (double-buffered)
           + 2 * C * T * in_bytes        # streaming k tile (double-buffered)
           + C * T * mxu_bytes           # cached qn scratch
           + 2 * T * 128 * 4             # (T, 1) running-stat scratches (lane pad)
           + 3 * T * T * 4)              # scores tile + exp temporaries
    vmem_limit = int(min(64 * 1024 * 1024, max(32 * 1024 * 1024, 2 * est)))

    cost = pl.CostEstimate(
        flops=2 * B * C * S * S,
        transcendentals=B * S * S,
        bytes_accessed=int((2 + n_q) * B * C * S * in_bytes + B * n_q * 4),
    )

    partial_sums = pl.pallas_call(
        kernel,
        out_shape=jax.ShapeDtypeStruct((B, n_q, 1, 1), jnp.float32),
        grid_spec=pltpu.PrefetchScalarGridSpec(
            num_scalar_prefetch=0,
            grid=(B, n_q, n_k),
            in_specs=[
                # q tile: resident across the key axis.
                pl.BlockSpec((1, C, T), lambda b, qi, ki: (b, 0, qi)),
                # diagonal-aligned k block (same element range as the q tile).
                pl.BlockSpec((1, C, T), lambda b, qi, ki: (b, 0, qi)),
                # streaming key tile.
                pl.BlockSpec((1, C, T), lambda b, qi, ki: (b, 0, ki)),
            ],
            out_specs=pl.BlockSpec((1, 1, 1, 1), lambda b, qi, ki: (b, qi, 0, 0)),
            scratch_shapes=[
                pltpu.VMEM((C, T), mxu_dtype),    # cached normalized q tile
                pltpu.VMEM((T, 1), jnp.float32),  # running row sum of exp
                pltpu.VMEM((T, 1), jnp.float32),  # running row max (use_max only)
            ],
        ),
        compiler_params=pltpu.CompilerParams(
            # Batch and q-tile axes carry no state -> shard across TensorCores
            # (2x on v7x even when B is small); key axis is the reduction.
            dimension_semantics=("parallel", "parallel", "arbitrary"),
            vmem_limit_bytes=vmem_limit,
        ),
        cost_estimate=cost,
    )(q, k, k)

    # Mean over all B*S rows (tiny reduction, done in plain JAX).
    return jnp.sum(partial_sums) / jnp.float32(B * S)


def _reference_loss(feat_q, feat_k, temperature=0.07):
    """Pure-JAX reference mirroring the PyTorch forward."""
    B, C, H, W = feat_q.shape
    S = H * W
    q = jnp.transpose(feat_q.reshape(B, C, S), (0, 2, 1)).astype(jnp.float32)
    k = jnp.transpose(feat_k.reshape(B, C, S), (0, 2, 1)).astype(jnp.float32)
    qn = q / jnp.maximum(jnp.sum(jnp.abs(q), axis=-1, keepdims=True), EPS)
    kn = k / jnp.maximum(jnp.sum(jnp.abs(k), axis=-1, keepdims=True), EPS)
    scores = jnp.einsum("bsd,btd->bst", qn, kn,
                        precision=jax.lax.Precision.HIGHEST) / temperature
    lse = jax.scipy.special.logsumexp(scores, axis=-1)
    diag = jnp.diagonal(scores, axis1=1, axis2=2)
    return jnp.mean(lse - diag)


if __name__ == "__main__":
    key = jax.random.PRNGKey(0)
    kq, kk = jax.random.split(key)
    # Small NCHW feature maps, consistent with the module's view(B, dim, -1).
    feat_q = jax.random.normal(kq, (2, 4, 16, 16), dtype=jnp.float32)
    feat_k = jax.random.normal(kk, (2, 4, 16, 16), dtype=jnp.float32)

    ref = jax.block_until_ready(_reference_loss(feat_q, feat_k, temperature=0.07))

    # Fast (default) config: bf16 MXU operands + approx reciprocal.  Tolerance
    # is deliberately loosened to cover the ~1e-3-level bf16/approx-recip error.
    loss = jax.block_until_ready(conloss_queue(feat_q, feat_k, temperature=0.07))
    assert jnp.allclose(loss, ref, rtol=2e-2, atol=2e-2), (loss, ref)

    # High-precision config exercising the multi-tile online-logsumexp path
    # (S=256 with tile=128 -> 2 q-tiles x 2 k-tiles per batch element).
    loss_hp = jax.block_until_ready(
        conloss_queue(feat_q, feat_k, temperature=0.07, tile=128,
                      mxu_dtype=jnp.float32, approx_recip=False))
    assert jnp.allclose(loss_hp, ref, rtol=2e-3, atol=2e-3), (loss_hp, ref)

    print("KERNEL_OK")
</pallas_src>

<mosaic_0001>
module attributes {stable_mosaic.version = 11 : i64} {
  func.func @_conloss_kernel(%arg0: i32, %arg1: i32, %arg2: i32, %arg3: memref<1x4x256xf32, #tpu.memory_space<vmem>>, %arg4: memref<1x4x256xf32, #tpu.memory_space<vmem>>, %arg5: memref<1x4x256xf32, #tpu.memory_space<vmem>>, %arg6: memref<1x1x1x1xf32, #tpu.memory_space<vmem>>, %arg7: memref<4x256xbf16, #tpu.memory_space<vmem>>, %arg8: memref<256x1xf32, #tpu.memory_space<vmem>>, %arg9: memref<256x1xf32, #tpu.memory_space<vmem>>) attributes {dimension_semantics = [#tpu.dimension_semantics<parallel>, #tpu.dimension_semantics<parallel>, #tpu.dimension_semantics<arbitrary>], iteration_bounds = array<i64: 2, 1, 1>, scalar_prefetch = 0 : i64, scratch_operands = 3 : i64, tpu.core_type = #tpu.core_type<tc>, window_params = [{transform_indices = @transform_0, window_bounds = array<i64: 1, 4, 256>}, {transform_indices = @transform_1, window_bounds = array<i64: 1, 4, 256>}, {transform_indices = @transform_2, window_bounds = array<i64: 1, 4, 256>}, {transform_indices = @transform_3, window_bounds = array<i64: 1, 1, 1, 1>}]} {
    %c0_i32 = arith.constant 0 : i32
    %0 = arith.cmpi eq, %arg2, %c0_i32 : i32
    %1 = arith.extui %0 : i1 to i32
    %cst = arith.constant 14.2857141 : f32
    %c0_i32_0 = arith.constant 0 : i32
    %2 = arith.cmpi ne, %1, %c0_i32_0 : i32
    scf.if %2 {
      %c0_16 = arith.constant 0 : index
      %c0_17 = arith.constant 0 : index
      %c0_18 = arith.constant 0 : index
      %25 = vector.load %arg3[%c0_16, %c0_17, %c0_18] : memref<1x4x256xf32, #tpu.memory_space<vmem>>, vector<1x4x256xf32>
      %26 = vector.shape_cast %25 : vector<1x4x256xf32> to vector<4x256xf32>
      %27 = math.absf %26 : vector<4x256xf32>
      %cst_19 = arith.constant dense<0.000000e+00> : vector<256xf32>
      %28 = vector.multi_reduction <add>, %27, %cst_19 [0] : vector<4x256xf32> to vector<256xf32>
      %29 = vector.shape_cast %28 : vector<256xf32> to vector<1x256xf32>
      %cst_20 = arith.constant 9.99999996E-13 : f32
      %30 = vector.broadcast %cst_20 : f32 to vector<1x256xf32>
      %31 = arith.maximumf %29, %30 : vector<1x256xf32>
      %32 = tpu.reciprocal %31 {approx = true} : vector<1x256xf32> -> vector<1x256xf32>
      %33 = vector.broadcast %cst : f32 to vector<1x256xf32>
      %34 = arith.mulf %32, %33 : vector<1x256xf32>
      %35 = vector.broadcast %34 : vector<1x256xf32> to vector<4x256xf32>
      %36 = arith.mulf %26, %35 : vector<4x256xf32>
      %37 = arith.truncf %36 : vector<4x256xf32> to vector<4x256xbf16>
      %c0_21 = arith.constant 0 : index
      %c0_22 = arith.constant 0 : index
      %38 = vector.load %arg7[%c0_21, %c0_22] : memref<4x256xbf16, #tpu.memory_space<vmem>>, vector<4x256xbf16>
      tpu.vector_store %arg7[%c0_21, %c0_22], %37 {strides = array<i32>} : memref<4x256xbf16, #tpu.memory_space<vmem>>, vector<4x256xbf16>,
      %cst_23 = arith.constant 0.000000e+00 : f32
      %39 = vector.broadcast %cst_23 : f32 to vector<256x1xf32>
      %c0_24 = arith.constant 0 : index
      %c0_25 = arith.constant 0 : index
      %40 = vector.load %arg8[%c0_24, %c0_25] : memref<256x1xf32, #tpu.memory_space<vmem>>, vector<256x1xf32>
      tpu.vector_store %arg8[%c0_24, %c0_25], %39 {strides = array<i32>} : memref<256x1xf32, #tpu.memory_space<vmem>>, vector<256x1xf32>,
    } else {
    }
    %c0 = arith.constant 0 : index
    %c0_1 = arith.constant 0 : index
    %c0_2 = arith.constant 0 : index
    %3 = vector.load %arg5[%c0, %c0_1, %c0_2] : memref<1x4x256xf32, #tpu.memory_space<vmem>>, vector<1x4x256xf32>
    %4 = vector.shape_cast %3 : vector<1x4x256xf32> to vector<4x256xf32>
    %5 = math.absf %4 : vector<4x256xf32>
    %cst_3 = arith.constant dense<0.000000e+00> : vector<256xf32>
    %6 = vector.multi_reduction <add>, %5, %cst_3 [0] : vector<4x256xf32> to vector<256xf32>
    %7 = vector.shape_cast %6 : vector<256xf32> to vector<1x256xf32>
    %cst_4 = arith.constant 9.99999996E-13 : f32
    %8 = vector.broadcast %cst_4 : f32 to vector<1x256xf32>
    %9 = arith.maximumf %7, %8 : vector<1x256xf32>
    %10 = tpu.reciprocal %9 {approx = true} : vector<1x256xf32> -> vector<1x256xf32>
    %11 = vector.broadcast %10 : vector<1x256xf32> to vector<4x256xf32>
    %12 = arith.mulf %4, %11 : vector<4x256xf32>
    %13 = arith.truncf %12 : vector<4x256xf32> to vector<4x256xbf16>
    %c0_5 = arith.constant 0 : index
    %c0_6 = arith.constant 0 : index
    %14 = vector.load %arg7[%c0_5, %c0_6] : memref<4x256xbf16, #tpu.memory_space<vmem>>, vector<4x256xbf16>
    %cst_7 = arith.constant dense<0.000000e+00> : vector<256x256xf32>
    %15 = tpu.matmul %14, %13, %cst_7 {dimension_numbers = #tpu.dot_dimension_numbers<[0], [0], [1], [1], [0, 1, 1, 1], [], []>} : vector<4x256xbf16>, vector<4x256xbf16>, vector<256x256xf32> -> vector<256x256xf32>
    %c0_8 = arith.constant 0 : index
    %c0_9 = arith.constant 0 : index
    %16 = vector.load %arg8[%c0_8, %c0_9] : memref<256x1xf32, #tpu.memory_space<vmem>>, vector<256x1xf32>
    %17 = math.exp %15 : vector<256x256xf32>
    %cst_10 = arith.constant dense<0.000000e+00> : vector<256xf32>
    %18 = vector.multi_reduction <add>, %17, %cst_10 [1] : vector<256x256xf32> to vector<256xf32>
    %19 = vector.shape_cast %18 : vector<256xf32> to vector<256x1xf32>
    %20 = arith.addf %16, %19 : vector<256x1xf32>
    %c0_11 = arith.constant 0 : index
    %c0_12 = arith.constant 0 : index
    %21 = vector.load %arg8[%c0_11, %c0_12] : memref<256x1xf32, #tpu.memory_space<vmem>>, vector<256x1xf32>
    tpu.vector_store %arg8[%c0_11, %c0_12], %20 {strides = array<i32>} : memref<256x1xf32, #tpu.memory_space<vmem>>, vector<256x1xf32>,
    %c0_i32_13 = arith.constant 0 : i32
    %22 = arith.cmpi eq, %arg2, %c0_i32_13 : i32
    %23 = arith.extui %22 : i1 to i32
    %cst_14 = arith.constant 14.2857141 : f32
    %c0_i32_15 = arith.constant 0 : i32
    %24 = arith.cmpi ne, %23, %c0_i32_15 : i32
    scf.if %24 {
      %c0_16 = arith.constant 0 : index
      %c0_17 = arith.constant 0 : index
      %c0_18 = arith.constant 0 : index
      %25 = vector.load %arg3[%c0_16, %c0_17, %c0_18] : memref<1x4x256xf32, #tpu.memory_space<vmem>>, vector<1x4x256xf32>
      %26 = vector.shape_cast %25 : vector<1x4x256xf32> to vector<4x256xf32>
      %c0_19 = arith.constant 0 : index
      %c0_20 = arith.constant 0 : index
      %c0_21 = arith.constant 0 : index
      %27 = vector.load %arg4[%c0_19, %c0_20, %c0_21] : memref<1x4x256xf32, #tpu.memory_space<vmem>>, vector<1x4x256xf32>
      %28 = vector.shape_cast %27 : vector<1x4x256xf32> to vector<4x256xf32>
      %29 = math.absf %26 : vector<4x256xf32>
      %cst_22 = arith.constant dense<0.000000e+00> : vector<256xf32>
      %30 = vector.multi_reduction <add>, %29, %cst_22 [0] : vector<4x256xf32> to vector<256xf32>
      %31 = vector.shape_cast %30 : vector<256xf32> to vector<1x256xf32>
      %cst_23 = arith.constant 9.99999996E-13 : f32
      %32 = vector.broadcast %cst_23 : f32 to vector<1x256xf32>
      %33 = arith.maximumf %31, %32 : vector<1x256xf32>
      %34 = tpu.reciprocal %33 {approx = true} : vector<1x256xf32> -> vector<1x256xf32>
      %35 = vector.broadcast %cst_14 : f32 to vector<1x256xf32>
      %36 = arith.mulf %34, %35 : vector<1x256xf32>
      %37 = vector.broadcast %36 : vector<1x256xf32> to vector<4x256xf32>
      %38 = arith.mulf %26, %37 : vector<4x256xf32>
      %39 = math.absf %28 : vector<4x256xf32>
      %cst_24 = arith.constant dense<0.000000e+00> : vector<256xf32>
      %40 = vector.multi_reduction <add>, %39, %cst_24 [0] : vector<4x256xf32> to vector<256xf32>
      %41 = vector.shape_cast %40 : vector<256xf32> to vector<1x256xf32>
      %cst_25 = arith.constant 9.99999996E-13 : f32
      %42 = vector.broadcast %cst_25 : f32 to vector<1x256xf32>
      %43 = arith.maximumf %41, %42 : vector<1x256xf32>
      %44 = tpu.reciprocal %43 {approx = true} : vector<1x256xf32> -> vector<1x256xf32>
      %45 = vector.broadcast %44 : vector<1x256xf32> to vector<4x256xf32>
      %46 = arith.mulf %28, %45 : vector<4x256xf32>
      %47 = arith.mulf %38, %46 : vector<4x256xf32>
      %cst_26 = arith.constant dense<0.000000e+00> : vector<256xf32>
      %48 = vector.multi_reduction <add>, %47, %cst_26 [0] : vector<4x256xf32> to vector<256xf32>
      %49 = vector.shape_cast %48 : vector<256xf32> to vector<1x256xf32>
      %c0_27 = arith.constant 0 : index
      %c0_28 = arith.constant 0 : index
      %50 = vector.load %arg8[%c0_27, %c0_28] : memref<256x1xf32, #tpu.memory_space<vmem>>, vector<256x1xf32>
      %51 = math.log %50 : vector<256x1xf32>
      %52 = vector.shape_cast %51 : vector<256x1xf32> to vector<1x256x1xf32>
      %cst_29 = arith.constant dense<0.000000e+00> : vector<1xf32>
      %53 = vector.multi_reduction <add>, %52, %cst_29 [1, 2] : vector<1x256x1xf32> to vector<1xf32>
      %54 = vector.shape_cast %53 : vector<1xf32> to vector<1x1x1xf32>
      %55 = vector.extract %54[0, 0, 0] : f32 from vector<1x1x1xf32>
      %56 = vector.shape_cast %49 : vector<1x256xf32> to vector<1x1x256xf32>
      %cst_30 = arith.constant dense<0.000000e+00> : vector<1xf32>
      %57 = vector.multi_reduction <add>, %56, %cst_30 [1, 2] : vector<1x1x256xf32> to vector<1xf32>
      %58 = vector.shape_cast %57 : vector<1xf32> to vector<1x1x1xf32>
      %59 = vector.extract %58[0, 0, 0] : f32 from vector<1x1x1xf32>
      %60 = arith.subf %55, %59 : f32
      %61 = vector.broadcast %60 : f32 to vector<1x1x1x1xf32>
      %c0_31 = arith.constant 0 : index
      %c0_32 = arith.constant 0 : index
      %c0_33 = arith.constant 0 : index
      %c0_34 = arith.constant 0 : index
      %62 = vector.load %arg6[%c0_31, %c0_32, %c0_33, %c0_34] : memref<1x1x1x1xf32, #tpu.memory_space<vmem>>, vector<1x1x1x1xf32>
      tpu.vector_store %arg6[%c0_31, %c0_32, %c0_33, %c0_34], %61 {strides = array<i32>} : memref<1x1x1x1xf32, #tpu.memory_space<vmem>>, vector<1x1x1x1xf32>,
    } else {
    }
    return
  }
  func.func @transform_0(%arg0: i32, %arg1: i32, %arg2: i32) -> (i32, i32, i32) {
    %c0_i32 = arith.constant 0 : i32
    %c0_i32_0 = arith.constant 0 : i32
    return %arg0, %c0_i32, %arg1 : i32, i32, i32
  }
  func.func @transform_1(%arg0: i32, %arg1: i32, %arg2: i32) -> (i32, i32, i32) {
    %c0_i32 = arith.constant 0 : i32
    %c0_i32_0 = arith.constant 0 : i32
    return %arg0, %c0_i32, %arg1 : i32, i32, i32
  }
  func.func @transform_2(%arg0: i32, %arg1: i32, %arg2: i32) -> (i32, i32, i32) {
    %c0_i32 = arith.constant 0 : i32
    %c0_i32_0 = arith.constant 0 : i32
    return %arg0, %c0_i32, %arg2 : i32, i32, i32
  }
  func.func @transform_3(%arg0: i32, %arg1: i32, %arg2: i32) -> (i32, i32, i32, i32) {
    %c0_i32 = arith.constant 0 : i32
    %c0_i32_0 = arith.constant 0 : i32
    %c0_i32_1 = arith.constant 0 : i32
    return %arg0, %arg1, %c0_i32, %c0_i32_0 : i32, i32, i32, i32
  }
}

</mosaic_0001>

<bundles_post_ra>
// kernel: tpu_custom_call.1
= control target key start
LH: loop header
LB: loop body
LE: loop exit
PB: predicated region body
PF: predicated region fallthrough
CT: control target
= control target key end

     0   :  { %8 = vsyncpa [#allocation6], 0  ;;  %s2286_s0 = inlined_call_operand.hbm [shape: f32[2,4,256], index: 0, kind: input, shape index: {}]   ;;  %s2287_s1 = inlined_call_operand.hbm [shape: f32[2,4,256], index: 1, kind: input, shape index: {}]   ;;  %s2288_s2 = inlined_call_operand.hbm [shape: f32[2,4,256], index: 2, kind: input, shape index: {}]   ;;  %s2289_s3 = inlined_call_operand.vmem [shape: f32[2,1,1,1], index: 3, kind: output, shape index: {}]  }
   0x1   :  { %10 = vsyncpa [#allocation6 + $0x1], 0 }
   0x2   :  { %11 = vsyncpa [#allocation8], 0 }
   0x3   :  { %13 = vsyncpa [#allocation8 + $0x1], 0  ;;  %s1924_s12 = smov 0   ;;  %s1926_s13 = smov 0  }
   0x4   :  { %s1928_s14 = smov 0   ;;  %s1930_s15 = smov 0  }
   0x5   :  { %s1932_s16 = smov 0   ;;  %s1934_s17 = smov 0  }
   0x6 LB: > { %s1430_s18 = sadd.s32 4294967295, %s1897_s17   ;;  %s38_s19 = sadd.s32 1, %s1893_s16  ;;  %s1897_s17 = sphi %s1934_s17, %s19_s17   ;;  %s1893_s16 = sphi %s1932_s16, %s2306_s16   ;;  %s1889_s15 = sphi %s1930_s15, %s2305_s15   ;;  %s1885_s14 = sphi %s1928_s14, %s2304_s14   ;;  %s1881_s13 = sphi %s1926_s13, %s2303_s13   ;;  %s1877_s12 = sphi %s1924_s12, %s2302_s12  }
   0x7   : > { %p40_p0 = scmp.ge.s32.totalorder %s38_s19, 2  ;;  %s47_s20 = sadd.s32 1, %s1885_s14 }
   0x8   : > { %p54_p1 = scmp.ne.s32.totalorder %s1885_s14, %s1881_s13  ;;  %p55_p2 = scmp.eq.s32.totalorder %s1897_s17, 0 }
   0x9   : > { %s2308_s19 = smov (%p40_p0, %s38_s19), 0  ;;  %p60_p4 = scmp.ne.s32.totalorder %s1881_s13, %s1877_s12 }
   0xa   : > { %p56_p3 = por %p55_p2, %p54_p1  ;;  %s42_s21 = ssub.s32 %s1893_s16, %s2308_s19 }
   0xb   : > { %p61_p5 = scmp.eq.s32.totalorder %s1430_s18, 0  ;;  %p45_p6 = scmp.eq.s32.totalorder %s42_s21, 0 }
   0xc   : > { %p1494_p8 = scmp.lt.s32.totalorder %s1897_s17, 2  ;;  %s168_s24 = sand.u32 1, %s1885_s14  }
   0xd   : > { %p1965_p7 = por %p61_p5, %p60_p4  ;;  %s1975_s25 = sshll.u32 %s1893_s16, 7 }
   0xe   : > { %s1971_s23 = scalar_select %p45_p6, %s1885_s14, %s47_s20  }
   0xf   : > { %s2293_s22 = scalar_select %p1965_p7, 1, 0 }
  0x10   : > { %s1979_s26 = sshll.u32 %s168_s24, 3  ;;  %p1981_p9 = pnand %p1494_p8, %p56_p3 }
  0x11   : > { %s189_s28 = sand.u32 1, %s1897_s17   ;;  %s1990_s4 = scalar_lea.hbm %s2287_s1, %s1975_s25 }
  0x12   : > { %s2294_s27 = scalar_select %p1981_p9, 1, 0 }
  0x13   : > { %s193_s5 = scalar_lea.vmem [#allocation7], %s1979_s26  ;;  %s1996_s7 = scalar_lea.sflag [#allocation8], %s189_s28 }
  0x14   : > { %s203_s6 = sshll.u32 %s193_s5, 4  ;;  %s1753_s8 = scalar_lea.hbm %s1990_s4, 128  ;;  %s1993_s6 = int_to_ptr.vmem [resolvable:$true] %s203_s6 }
  0x15   : > { %p1754_p11 = scmp.ne.s32.totalorder %s1990_s4, %s1753_s8  ;;  %p2002_p12 = pneg %p1981_p9 }
  0x16   : > { %s1758_s12 = scalar_lea.hbm %s2287_s1, 256  ;;  %p1759_p1 = scmp.lt.u32.totalorder %s1990_s4, %s2287_s1 }
  0x17   : > { %p1756_p13 = pnand %p2002_p12, %p1754_p11  ;;  %p1760_p2 = scmp.lt.u32.totalorder %s1758_s12, %s1753_s8 }
  0x18   : > { %p1762_p4 = scmp.lt.u32.totalorder %s1753_s8, %s1990_s4 }
  0x19   : > { %p1757_p0 = pneg %p1756_p13  ;;  %p1761_p3 = por %p1760_p2, %p1759_p1 }
  0x1b   : > { %p1763_p5 = por %p1762_p4, %p1761_p3 }
  0x1d   : > { %p1764_p6 = pnand %p1763_p5, %p1757_p0 }
  0x1f   : > { %1767 = shalt.err (!%p1764_p6)
}
  0x20   : > { %s1768_s28 = scalar_lea.vmem %s1993_s6, 128  ;;  %s1899_s29 = smov [#allocation7]  }
  0x21   : > { %p1769_p8 = scmp.ne.s32.totalorder %s1993_s6, %s1768_s28  ;;  %s1773_s30 = sshll.u32 %s1899_s29, 4  ;;  %s1774_s30 = int_to_ptr.vmem [resolvable:$false] %s1773_s30 }
  0x22   : > { %s1775_s5 = scalar_lea.vmem %s1774_s30, 256  ;;  %p1776_p10 = scmp.lt.s32.totalorder %s1993_s6, %s1774_s30 }
  0x23   : > { %p1771_p11 = pnand %p1769_p8, %p2002_p12  ;;  %p1777_p7 = scmp.lt.s32.totalorder %s1775_s5, %s1768_s28 }
  0x25   : > { %p1772_p13 = pneg %p1771_p11  ;;  %p1778_p1 = por %p1777_p7, %p1776_p10 }
  0x27   : > { %p1779_p2 = pnand %p1778_p1, %p1772_p13 }
  0x29   : > { %1782 = shalt.err (!%p1779_p2)
}
  0x2a   : > { %1490 = dma.hbm_to_vmem [thread:$0]  (!%p1981_p9), %s1990_s4, 128, %s1993_s6, %s1996_s7  }
  0x2b   : > { %p229_p0 = scmp.lt.s32.totalorder %s1897_s17, 3  ;;  %p2296_p3 = scmp.ge.s32.totalorder %s1897_s17, 1 }
  0x2c   : > { %s2037_s12 = scalar_lea.hbm %s2286_s0, %s1975_s25  ;;  %s172_s20 = scalar_lea.vmem [#allocation5], %s1979_s26 }
  0x2d   : > { %p2029_p4 = pnand %p2296_p3, %p229_p0  ;;  %s182_s21 = sshll.u32 %s172_s20, 4  ;;  %s183_s21 = int_to_ptr.vmem [resolvable:$true] %s182_s21 }
  0x2e   : > { %s169_s4 = scalar_lea.sflag [#allocation6], %s168_s24  ;;  %s1783_s6 = scalar_lea.hbm %s2037_s12, 128 }
  0x2f   : > { %s2297_s8 = scalar_select %p2029_p4, 1, 0 }
  0x30   : > { %p1784_p7 = scmp.ne.s32.totalorder %s2037_s12, %s1783_s6  ;;  %s1788_s30 = scalar_lea.hbm %s2286_s0, 256 }
  0x31   : > { %p1789_p6 = scmp.lt.u32.totalorder %s2037_s12, %s2286_s0  ;;  %p1790_p8 = scmp.lt.u32.totalorder %s1788_s30, %s1783_s6 }
  0x32   : > { %p1786_p10 = pnand %p1784_p7, %p2002_p12  ;;  %p1792_p13 = scmp.lt.u32.totalorder %s1783_s6, %s2037_s12 }
  0x33   : > { %p1791_p11 = por %p1790_p8, %p1789_p6 }
  0x34   : > { %p1787_p5 = pneg %p1786_p10 }
  0x35   : > { %p1793_p1 = por %p1792_p13, %p1791_p11 }
  0x37   : > { %p1794_p2 = pnand %p1793_p1, %p1787_p5 }
  0x39   : > { %1797 = shalt.err (!%p1794_p2)
}
  0x3a   : > { %s1798_s24 = scalar_lea.vmem %s183_s21, 128  ;;  %s1900_s11 = smov [#allocation5]  }
  0x3b   : > { %p1799_p0 = scmp.ne.s32.totalorder %s183_s21, %s1798_s24  ;;  %s1803_s20 = sshll.u32 %s1900_s11, 4  ;;  %s1804_s20 = int_to_ptr.vmem [resolvable:$false] %s1803_s20 }
  0x3c   : > { %s1805_s28 = scalar_lea.vmem %s1804_s20, 256  ;;  %p1806_p10 = scmp.lt.s32.totalorder %s183_s21, %s1804_s20 }
  0x3d   : > { %p1801_p3 = pnand %p1799_p0, %p2002_p12  ;;  %p1807_p4 = scmp.lt.s32.totalorder %s1805_s28, %s1798_s24 }
  0x3f   : > { %p1802_p7 = pneg %p1801_p3  ;;  %p1808_p9 = por %p1807_p4, %p1806_p10 }
  0x41   : > { %p1809_p6 = pnand %p1808_p9, %p1802_p7 }
  0x43   : > { %1812 = shalt.err (!%p1809_p6)
}
  0x44   : > { %p2298_p8 = scmp.ne.s32.totalorder %s2294_s27, 0  ;;  %s2063_s30 = scalar_lea.hbm %s2288_s2, %s1975_s25 }
  0x45   : > { %s214_s5 = scalar_lea.vmem [#allocation9], %s1979_s26  ;;  %s1813_s24 = scalar_lea.hbm %s2063_s30, 128 }
  0x46   : > { %1487 = dma.hbm_to_vmem [thread:$0]  (!%p2298_p8), %s2037_s12, 128, %s183_s21, %s169_s4  }
  0x47   : > { %s224_s10 = sshll.u32 %s214_s5, 4  ;;  %p1814_p9 = scmp.ne.s32.totalorder %s2063_s30, %s1813_s24  ;;  %s225_s10 = int_to_ptr.vmem [resolvable:$true] %s224_s10 }
  0x48   : > { %s1818_s12 = scalar_lea.hbm %s2288_s2, 256  ;;  %p1819_p11 = scmp.lt.u32.totalorder %s2063_s30, %s2288_s2 }
  0x49   : > { %p1816_p4 = pnand %p1814_p9, %p2002_p12  ;;  %p1820_p13 = scmp.lt.u32.totalorder %s1818_s12, %s1813_s24 }
  0x4a   : > { %p1822_p2 = scmp.lt.u32.totalorder %s1813_s24, %s2063_s30 }
  0x4b   : > { %p1817_p5 = pneg %p1816_p4  ;;  %p1821_p1 = por %p1820_p13, %p1819_p11 }
  0x4d   : > { %p1823_p0 = por %p1822_p2, %p1821_p1 }
  0x4f   : > { %p1824_p3 = pnand %p1823_p0, %p1817_p5 }
  0x51   : > { %1827 = shalt.err (!%p1824_p3)
}
  0x52   : > { %s1828_s25 = scalar_lea.vmem %s225_s10, 128  ;;  %s1901_s26 = smov [#allocation9]  }
  0x53   : > { %p1829_p7 = scmp.ne.s32.totalorder %s225_s10, %s1828_s25  ;;  %s1833_s28 = sshll.u32 %s1901_s26, 4  ;;  %s1834_s28 = int_to_ptr.vmem [resolvable:$false] %s1833_s28 }
  0x54   : > { %s1835_s6 = scalar_lea.vmem %s1834_s28, 256  ;;  %p1836_p9 = scmp.lt.s32.totalorder %s225_s10, %s1834_s28 }
  0x55   : > { %p1831_p10 = pnand %p1829_p7, %p2002_p12  ;;  %p1837_p4 = scmp.lt.s32.totalorder %s1835_s6, %s1828_s25 }
  0x57   : > { %p1832_p6 = pneg %p1831_p10  ;;  %p1838_p8 = por %p1837_p4, %p1836_p9 }
  0x59   : > { %p1839_p11 = pnand %p1838_p8, %p1832_p6 }
  0x5b   : > { %1842 = shalt.err (!%p1839_p11)
}
  0x5c   : > { %p2299_p13 = scmp.ne.s32.totalorder %s2294_s27, 0  ;;  %p2300_p5 = scmp.ne.s32.totalorder %s2297_s8, 0 }
  0x5d   : > { %s235_s9 = sand.u32 (!%p2300_p5), 1, %s1881_s13   ;;  %p2301_p12 = scmp.ne.s32.totalorder (!%p2300_p5), %s2293_s22, 0 }
  0x5e   : > { %1493 = dma.hbm_to_vmem [thread:$0]  (!%p2299_p13), %s2063_s30, 128, %s225_s10, %s1996_s7  }
  0x5f   : > { %233 = sbr.rel (%p2300_p5) target bundleno = 959 (0x3bf), region = 32  ;;  %s2087_s29 = sshll.u32 (!%p2300_p5), %s235_s9, 3 }
  0x60   : > { %s236_s5 = scalar_lea.sflag (!%p2300_p5), [#allocation6], %s235_s9  ;;  %s239_s24 = scalar_lea.vmem (!%p2300_p5), [#allocation5], %s2087_s29 }
  0x66   : > { %1868 = dma.done.wait (%p2301_p12), %s236_s5, 128  }
  0x67   : > { %1870 = vsyncadd (%p2301_p12), %s236_s5, 4294967168  ;;  %s244_s27 = sand.u32 1, %s1430_s18   ;;  %s248_s8 = scalar_lea.vmem [#allocation7], %s2087_s29 }
  0x68   : > { %s245_s7 = scalar_lea.sflag [#allocation8], %s244_s27 }
  0x69   : > { %1872 = dma.done.wait (%p2301_p12), %s245_s7, 256  }
  0x6a   : > { %1874 = vsyncadd (%p2301_p12), %s245_s7, 4294967040  ;;  %v1902_v0 = vmov 0   ;;  %v305_v1 = vld [vmem:[%s239_s24] sm:$0xff]  ;;  %vm310_vm0 = vcmask 1043456   ;;  %s257_s30 = scalar_lea.vmem [#allocation9], %s2087_s29  ;;  %vm513_vm1 = vcmask 1041408  }
  0x6b   : > { %552 = vmatprep.mubr.bf16.mxu0 %v1902_v0  ;;  %632 = vmatprep.mubr.bf16.mxu1 %v1902_v0  ;;  %v386_v2 = vld [vmem:[%s257_s30] sm:$0xff]  ;;  %v306_v3 = vand.u32 2147483647, %v305_v1  ;;  %vm464_vm2 = vcmask 31744   ;;  %vm353_vm3 = vcmask 7168   ;;  %vm1281_vm4 = vcmask 1040384  }
  0x6c   : > { %v387_v4 = vand.u32 2147483647, %v386_v2  ;;  %p294_p8 = scmp.lt.s32.totalorder %s1889_s15, 1  ;;  %vm1296_vm5 = vcmask 0  }
  0x6d   : > { %v308_v5 = vcombine.high %v306_v3, %v306_v3  ;;  %v311_v6 = vsel %vm310_vm0, %v306_v3, 0.0 }
  0x6e   : > { %v389_v7 = vcombine.high %v387_v4, %v387_v4  ;;  %v392_v8 = vsel %vm310_vm0, %v387_v4, 0.0  ;;  %v312_v9 = vrot.slane %v311_v6, 4  ;;  %s2310_s15 = smov (!%p294_p8, %s1889_s15), 1 }
  0x6f   : > { %v393_v10 = vrot.slane %v392_v8, 4  ;;  %v318_v11 = vsel %vm310_vm0, %v308_v5, 0.0  ;;  %s299_s20 = scalar_lea.vmem %s2289_s3, %s2310_s15 }
  0x70   : > { %v399_v12 = vsel %vm310_vm0, %v389_v7, 0.0  ;;  %v313_v13 = vadd.f32 %v312_v9, %v311_v6  ;;  %v319_v14 = vrot.slane %v318_v11, 4 }
  0x71   : > { %v394_v15 = vadd.f32 %v393_v10, %v392_v8  ;;  %v400_v16 = vrot.slane %v399_v12, 4  ;;  %v1903_v10 = vmov 0.0  }
  0x72   : > { %v314_v17 = vrot.slane %v313_v13, 2  ;;  %v320_v18 = vadd.f32 %v319_v14, %v318_v11  ;;  %354 = vst.msk [vmem:[#allocation3] sm:$0xff] %vm353_vm3, %v1903_v10  ;;  %355 = vst.msk [vmem:[#allocation3 + $0x8] sm:$0xff] %vm353_vm3, %v1903_v10 }
  0x73   : > { %v395_v19 = vrot.slane %v394_v15, 2  ;;  %v401_v20 = vadd.f32 %v400_v16, %v399_v12  ;;  %356 = vst.msk [vmem:[#allocation3 + $0x10] sm:$0xff] %vm353_vm3, %v1903_v10  ;;  %357 = vst.msk [vmem:[#allocation3 + $0x18] sm:$0xff] %vm353_vm3, %v1903_v10 }
  0x74   : > { %v315_v21 = vadd.f32 %v314_v17, %v313_v13  ;;  %v321_v22 = vrot.slane %v320_v18, 2  ;;  %358 = vst.msk [vmem:[#allocation3 + $0x20] sm:$0xff] %vm353_vm3, %v1903_v10  ;;  %359 = vst.msk [vmem:[#allocation3 + $0x28] sm:$0xff] %vm353_vm3, %v1903_v10 }
  0x75   : > { %v396_v23 = vadd.f32 %v395_v19, %v394_v15  ;;  %v402_v24 = vrot.slane %v401_v20, 2  ;;  %360 = vst.msk [vmem:[#allocation3 + $0x30] sm:$0xff] %vm353_vm3, %v1903_v10  ;;  %361 = vst.msk [vmem:[#allocation3 + $0x38] sm:$0xff] %vm353_vm3, %v1903_v10 }
  0x76   : > { %v316_v25 = vrot.slane %v315_v21, 1  ;;  %v322_v26 = vadd.f32 %v321_v22, %v320_v18  ;;  %362 = vst.msk [vmem:[#allocation3 + $0x40] sm:$0xff] %vm353_vm3, %v1903_v10  ;;  %363 = vst.msk [vmem:[#allocation3 + $0x48] sm:$0xff] %vm353_vm3, %v1903_v10 }
  0x77   : > { %v397_v27 = vrot.slane %v396_v23, 1  ;;  %v403_v28 = vadd.f32 %v402_v24, %v401_v20  ;;  %364 = vst.msk [vmem:[#allocation3 + $0x50] sm:$0xff] %vm353_vm3, %v1903_v10  ;;  %365 = vst.msk [vmem:[#allocation3 + $0x58] sm:$0xff] %vm353_vm3, %v1903_v10 }
  0x78   : > { %v317_v29 = vadd.f32 %v316_v25, %v315_v21  ;;  %v323_v30 = vrot.slane %v322_v26, 1  ;;  %366 = vst.msk [vmem:[#allocation3 + $0x60] sm:$0xff] %vm353_vm3, %v1903_v10  ;;  %367 = vst.msk [vmem:[#allocation3 + $0x68] sm:$0xff] %vm353_vm3, %v1903_v10 }
  0x79   : > { %v398_v31 = vadd.f32 %v397_v27, %v396_v23  ;;  %v404_v32 = vrot.slane %v403_v28, 1  ;;  %368 = vst.msk [vmem:[#allocation3 + $0x70] sm:$0xff] %vm353_vm3, %v1903_v10  ;;  %369 = vst.msk [vmem:[#allocation3 + $0x78] sm:$0xff] %vm353_vm3, %v1903_v10 }
  0x7a   : > { %v324_v33 = vadd.f32 %v323_v30, %v322_v26  ;;  %v325_v34 = vmax.f32 %v317_v29, 1e-12  ;;  %370 = vst.msk [vmem:[#allocation3 + $0x80] sm:$0xff] %vm353_vm3, %v1903_v10  ;;  %371 = vst.msk [vmem:[#allocation3 + $0x88] sm:$0xff] %vm353_vm3, %v1903_v10 }
  0x7b   : > { %v405_v35 = vadd.f32 %v404_v32, %v403_v28  ;;  %v406_v36 = vmax.f32 %v398_v31, 1e-12  ;;  %372 = vst.msk [vmem:[#allocation3 + $0x90] sm:$0xff] %vm353_vm3, %v1903_v10  ;;  %373 = vst.msk [vmem:[#allocation3 + $0x98] sm:$0xff] %vm353_vm3, %v1903_v10 }
  0x7c   : > { %v326_v37 = vmax.f32 %v324_v33, 1e-12  ;;  %1545 = vrcp.f32 %v325_v34  ;;  %374 = vst.msk [vmem:[#allocation3 + $0xa0] sm:$0xff] %vm353_vm3, %v1903_v10  ;;  %375 = vst.msk [vmem:[#allocation3 + $0xa8] sm:$0xff] %vm353_vm3, %v1903_v10 }
  0x7d   : > { %v407_v38 = vmax.f32 %v405_v35, 1e-12  ;;  %1547 = vrcp.f32 %v406_v36  ;;  %376 = vst.msk [vmem:[#allocation3 + $0xb0] sm:$0xff] %vm353_vm3, %v1903_v10  ;;  %377 = vst.msk [vmem:[#allocation3 + $0xb8] sm:$0xff] %vm353_vm3, %v1903_v10 }
  0x7e   : > { %1549 = vrcp.f32 %v326_v37  ;;  %378 = vst.msk [vmem:[#allocation3 + $0xc0] sm:$0xff] %vm353_vm3, %v1903_v10  ;;  %379 = vst.msk [vmem:[#allocation3 + $0xc8] sm:$0xff] %vm353_vm3, %v1903_v10 }
  0x7f   : > { %1551 = vrcp.f32 %v407_v38  ;;  %380 = vst.msk [vmem:[#allocation3 + $0xd0] sm:$0xff] %vm353_vm3, %v1903_v10  ;;  %381 = vst.msk [vmem:[#allocation3 + $0xd8] sm:$0xff] %vm353_vm3, %v1903_v10 }
  0x80   : > { %382 = vst.msk [vmem:[#allocation3 + $0xe0] sm:$0xff] %vm353_vm3, %v1903_v10  ;;  %383 = vst.msk [vmem:[#allocation3 + $0xe8] sm:$0xff] %vm353_vm3, %v1903_v10 }
  0x81   : > { %384 = vst.msk [vmem:[#allocation3 + $0xf0] sm:$0xff] %vm353_vm3, %v1903_v10  ;;  %385 = vst.msk [vmem:[#allocation3 + $0xf8] sm:$0xff] %vm353_vm3, %v1903_v10 }
  0x86   : > { %v1546_v39 = vpop.eup %1545 }
  0x87   : > { %v1548_v40 = vpop.eup %1547  ;;  %v329_v41 = vmul.f32 14.285714, %v1546_v39 }
  0x88   : > { %v1550_v42 = vpop.eup %1549 }
  0x89   : > { %v1552_v43 = vpop.eup %1551  ;;  %v330_v44 = vmul.f32 14.285714, %v1550_v42 }
  0x8a   : > { %v412_v45 = vcombine.low %v1548_v40, %v1552_v43 }
  0x8b   : > { %v333_v46 = vcombine.low %v329_v41, %v330_v44 }
  0x8c   : > { %v414_v47 = vmul.f32 %v412_v45, %v386_v2 }
  0x8d   : > { %v335_v48 = vmul.f32 %v333_v46, %v305_v1 }
  0x8e   : > { %v416_v49 = vcombine.high %v414_v47, %v414_v47  ;;  %v418_v50 = vpack.c.bf16 %v414_v47, %v414_v47 }
  0x8f   : > { %v337_v51 = vcombine.high %v335_v48, %v335_v48 }
  0x90   : > { %v419_v52 = vpack.c.bf16 %v416_v49, %v416_v49  ;;  %v515_v53 = vsel %vm513_vm1, %v418_v50, 0 }
  0x91   : > { %v1447_v54 = vpack.c.bf16 %v337_v51, %v335_v48 }
  0x92   : > { %1450 = vmatprep.subr.msk.bf16.mxu0 %vm513_vm1, %v419_v52  ;;  %1472 = vmatprep.subr.msk.bf16.mxu1 %vm513_vm1, %v419_v52 }
  0x93   : > { %1448 = vst.sshfl [vmem:[#allocation2] sm:$0x33 pattern:$0x76325410] %v1447_v54  ;;  %521 = vmatpush1.bf16.msra.mxu0 %v515_v53  ;;  %1473 = vmatpush1.bf16.msra.mxu1 %v515_v53 }
  0x9a   : > { %v1449_v55 = vld.sshfl [vmem:[#allocation2] sm:$0x33 pattern:$0x76325410] }
  0x9b   : > { %432 = vxpose.xlu0.c.b16.start.end [1/1] (short) %v1449_v55, 128  ;;  %v429_v56 = vcombine.high %v1449_v55, %v1449_v55 }
  0xb8   : > { %448 = vxpose.xlu0.c.b16.start.end [1/1] (short) %v429_v56, 128 }
 0x101   : > { %v440_v57 = vpop.trf.xlu0 }
 0x102   : > { %1451 = vmatmul.mubr.msk.bf16.vlgmr.msra.gmra.mrb[0].mxu0 %vm464_vm2, %v440_v57 }
 0x103   : > { %562 = vmatprep.mubr.bf16.mxu0 %v1902_v0 }
 0x105   : > { %v441_v58 = vpop.trf.xlu0 }
 0x109   : > { %v442_v59 = vpop.trf.xlu0 }
 0x10a   : > { %1452 = vmatmul.mubr.msk.bf16.gmra.mrb[4].mxu0 %vm464_vm2, %v441_v58 }
 0x10b   : > { %572 = vmatprep.mubr.bf16.mxu0 %v1902_v0 }
 0x10d   : > { %v443_v60 = vpop.trf.xlu0 }
 0x111   : > { %v444_v61 = vpop.trf.xlu0 }
 0x112   : > { %1453 = vmatmul.mubr.msk.bf16.gmra.mrb[8].mxu0 %vm464_vm2, %v442_v59 }
 0x113   : > { %582 = vmatprep.mubr.bf16.mxu0 %v1902_v0 }
 0x115   : > { %v445_v62 = vpop.trf.xlu0 }
 0x119   : > { %v446_v63 = vpop.trf.xlu0 }
 0x11a   : > { %1454 = vmatmul.mubr.msk.bf16.gmra.mrb[12].mxu0 %vm464_vm2, %v443_v60 }
 0x11b   : > { %592 = vmatprep.mubr.bf16.mxu0 %v1902_v0 }
 0x11d   : > { %v447_v1 = vpop.trf.xlu0 }
 0x121   : > { %v456_v2 = vpop.trf.xlu0 }
 0x122   : > { %1455 = vmatmul.mubr.msk.bf16.gmra.mrb[16].mxu0 %vm464_vm2, %v444_v61  ;;  %1459 = vmatmul.mubr.msk.bf16.vlgmr.msra.gmra.mrb[0].mxu1 %vm464_vm2, %v456_v2 }
 0x123   : > { %602 = vmatprep.mubr.bf16.mxu0 %v1902_v0  ;;  %642 = vmatprep.mubr.bf16.mxu1 %v1902_v0 }
 0x125   : > { %v457_v3 = vpop.trf.xlu0 }
 0x129   : > { %v458_v4 = vpop.trf.xlu0 }
 0x12a   : > { %1456 = vmatmul.mubr.msk.bf16.gmra.mrb[20].mxu0 %vm464_vm2, %v445_v62  ;;  %1460 = vmatmul.mubr.msk.bf16.gmra.mrb[4].mxu1 %vm464_vm2, %v457_v3 }
 0x12b   : > { %612 = vmatprep.mubr.bf16.mxu0 %v1902_v0  ;;  %652 = vmatprep.mubr.bf16.mxu1 %v1902_v0 }
 0x12d   : > { %v459_v5 = vpop.trf.xlu0 }
 0x131   : > { %v460_v6 = vpop.trf.xlu0 }
 0x132   : > { %1457 = vmatmul.mubr.msk.bf16.gmra.mrb[24].mxu0 %vm464_vm2, %v446_v63  ;;  %1461 = vmatmul.mubr.msk.bf16.gmra.mrb[8].mxu1 %vm464_vm2, %v458_v4 }
 0x133   : > { %622 = vmatprep.mubr.bf16.mxu0 %v1902_v0  ;;  %662 = vmatprep.mubr.bf16.mxu1 %v1902_v0 }
 0x135   : > { %v461_v7 = vpop.trf.xlu0 }
 0x139   : > { %v462_v8 = vpop.trf.xlu0 }
 0x13a   : > { %1458 = vmatmul.mubr.msk.bf16.gmra.mrb[28].mxu0 %vm464_vm2, %v447_v1  ;;  %1462 = vmatmul.mubr.msk.bf16.gmra.mrb[12].mxu1 %vm464_vm2, %v459_v5 }
 0x13b   : > { %672 = vmatprep.mubr.bf16.mxu1 %v1902_v0 }
 0x13d   : > { %v463_v9 = vpop.trf.xlu0 }
 0x142   : > { %1463 = vmatmul.mubr.msk.bf16.gmra.mrb[16].mxu1 %vm464_vm2, %v460_v6 }
 0x143   : > { %682 = vmatprep.mubr.bf16.mxu1 %v1902_v0 }
 0x14a   : > { %1464 = vmatmul.mubr.msk.bf16.gmra.mrb[20].mxu1 %vm464_vm2, %v461_v7 }
 0x14b   : > { %692 = vmatprep.mubr.bf16.mxu1 %v1902_v0 }
 0x152   : > { %1465 = vmatmul.mubr.msk.bf16.gmra.mrb[24].mxu1 %vm464_vm2, %v462_v8 }
 0x153   : > { %702 = vmatprep.mubr.bf16.mxu1 %v1902_v0 }
 0x15a   : > { %1466 = vmatmul.mubr.msk.bf16.gmra.mrb[28].mxu1 %vm464_vm2, %v463_v9 }
 0x1d5   : > { %v554_v0 = vpop.f32.mrb[0].mxu0 }
 0x1d6   : > { %v745_v11 = vmul.f32 1.442695, %v554_v0  ;;  %v556_v12 = vpop.f32.mrb[1].mxu0 }
 0x1d7   : > { %v747_v13 = vmul.f32 1.442695, %v556_v12  ;;  %v558_v14 = vpop.f32.mrb[2].mxu0 }
 0x1d8   : > { %1553 = vpow2.f32 %v745_v11  ;;  %v749_v15 = vmul.f32 1.442695, %v558_v14  ;;  %v560_v16 = vpop.f32.mrb[3].mxu0 }
 0x1d9   : > { %1555 = vpow2.f32 %v747_v13  ;;  %v751_v17 = vmul.f32 1.442695, %v560_v16 }
 0x1da   : > { %1557 = vpow2.f32 %v749_v15 }
 0x1db   : > { %1559 = vpow2.f32 %v751_v17 }
 0x1dd   : > { %v564_v18 = vpop.f32.mrb[4].mxu0 }
 0x1de   : > { %v753_v19 = vmul.f32 1.442695, %v564_v18  ;;  %v566_v20 = vpop.f32.mrb[5].mxu0 }
 0x1df   : > { %v755_v21 = vmul.f32 1.442695, %v566_v20  ;;  %v568_v22 = vpop.f32.mrb[6].mxu0 }
 0x1e0   : > { %1561 = vpow2.f32 %v753_v19  ;;  %v757_v23 = vmul.f32 1.442695, %v568_v22  ;;  %v570_v24 = vpop.f32.mrb[7].mxu0 }
 0x1e1   : > { %1563 = vpow2.f32 %v755_v21  ;;  %v759_v25 = vmul.f32 1.442695, %v570_v24 }
 0x1e2   : > { %v1554_v26 = vpop.eup %1553  ;;  %1565 = vpow2.f32 %v757_v23 }
 0x1e3   : > { %v1556_v27 = vpop.eup %1555  ;;  %1567 = vpow2.f32 %v759_v25 }
 0x1e4   : > { %v1558_v28 = vpop.eup %1557  ;;  %v873_v29 = vadd.f32 %v1556_v27, %v1554_v26 }
 0x1e5   : > { %v1560_v30 = vpop.eup %1559  ;;  %v574_v31 = vpop.f32.mrb[8].mxu0 }
 0x1e6   : > { %v761_v32 = vmul.f32 1.442695, %v574_v31  ;;  %874 = vadd.xlane.f32.xlu1 %v873_v29  ;;  %v576_v33 = vpop.f32.mrb[9].mxu0  ;;  %v876_v34 = vadd.f32 %v1560_v30, %v1558_v28 }
 0x1e7   : > { %v763_v35 = vmul.f32 1.442695, %v576_v33  ;;  %v578_v36 = vpop.f32.mrb[10].mxu0 }
 0x1e8   : > { %1569 = vpow2.f32 %v761_v32  ;;  %v765_v37 = vmul.f32 1.442695, %v578_v36  ;;  %v580_v38 = vpop.f32.mrb[11].mxu0 }
 0x1e9   : > { %1571 = vpow2.f32 %v763_v35  ;;  %v767_v39 = vmul.f32 1.442695, %v580_v38 }
 0x1ea   : > { %v1562_v40 = vpop.eup %1561  ;;  %1573 = vpow2.f32 %v765_v37  ;;  %877 = vadd.xlane.f32.xlu1 %v876_v34 }
 0x1eb   : > { %v1564_v41 = vpop.eup %1563  ;;  %1575 = vpow2.f32 %v767_v39 }
 0x1ec   : > { %v1566_v42 = vpop.eup %1565  ;;  %v879_v43 = vadd.f32 %v1564_v41, %v1562_v40 }
 0x1ed   : > { %v1568_v44 = vpop.eup %1567  ;;  %v584_v45 = vpop.f32.mrb[12].mxu0 }
 0x1ee   : > { %v769_v46 = vmul.f32 1.442695, %v584_v45  ;;  %880 = vadd.xlane.f32.xlu1 %v879_v43  ;;  %v586_v47 = vpop.f32.mrb[13].mxu0  ;;  %v882_v48 = vadd.f32 %v1568_v44, %v1566_v42 }
 0x1ef   : > { %v771_v49 = vmul.f32 1.442695, %v586_v47  ;;  %v588_v50 = vpop.f32.mrb[14].mxu0 }
 0x1f0   : > { %1577 = vpow2.f32 %v769_v46  ;;  %v773_v51 = vmul.f32 1.442695, %v588_v50  ;;  %v590_v52 = vpop.f32.mrb[15].mxu0 }
 0x1f1   : > { %1579 = vpow2.f32 %v771_v49  ;;  %v775_v53 = vmul.f32 1.442695, %v590_v52 }
 0x1f2   : > { %v1570_v54 = vpop.eup %1569  ;;  %1581 = vpow2.f32 %v773_v51  ;;  %883 = vadd.xlane.f32.xlu1 %v882_v48 }
 0x1f3   : > { %v1572_v55 = vpop.eup %1571  ;;  %1583 = vpow2.f32 %v775_v53 }
 0x1f4   : > { %v1574_v56 = vpop.eup %1573  ;;  %v885_v57 = vadd.f32 %v1572_v55, %v1570_v54 }
 0x1f5   : > { %v1576_v58 = vpop.eup %1575  ;;  %v594_v59 = vpop.f32.mrb[16].mxu0 }
 0x1f6   : > { %v634_v60 = vpop.f32.mrb[0].mxu1  ;;  %v777_v61 = vmul.f32 1.442695, %v594_v59  ;;  %886 = vadd.xlane.f32.xlu1 %v885_v57  ;;  %v596_v62 = vpop.f32.mrb[17].mxu0  ;;  %v888_v2 = vadd.f32 %v1576_v58, %v1574_v56 }
 0x1f7   : > { %v809_v63 = vmul.f32 1.442695, %v634_v60  ;;  %v636_v1 = vpop.f32.mrb[1].mxu1  ;;  %v779_v3 = vmul.f32 1.442695, %v596_v62  ;;  %v598_v4 = vpop.f32.mrb[18].mxu0 }
 0x1f8   : > { %v638_v5 = vpop.f32.mrb[2].mxu1  ;;  %1585 = vpow2.f32 %v777_v61  ;;  %v781_v6 = vmul.f32 1.442695, %v598_v4  ;;  %v811_v7 = vmul.f32 1.442695, %v636_v1  ;;  %v600_v8 = vpop.f32.mrb[19].mxu0 }
 0x1f9   : > { %v640_v9 = vpop.f32.mrb[3].mxu1  ;;  %1587 = vpow2.f32 %v779_v3  ;;  %v783_v10 = vmul.f32 1.442695, %v600_v8  ;;  %v813_v11 = vmul.f32 1.442695, %v638_v5 }
 0x1fa   : > { %v1578_v0 = vpop.eup %1577  ;;  %1589 = vpow2.f32 %v809_v63  ;;  %889 = vadd.xlane.f32.xlu1 %v888_v2  ;;  %v815_v13 = vmul.f32 1.442695, %v640_v9 }
 0x1fb   : > { %v1580_v12 = vpop.eup %1579  ;;  %1591 = vpow2.f32 %v781_v6 }
 0x1fc   : > { %v1582_v14 = vpop.eup %1581  ;;  %1593 = vpow2.f32 %v811_v7  ;;  %v891_v15 = vadd.f32 %v1580_v12, %v1578_v0 }
 0x1fd   : > { %v1584_v16 = vpop.eup %1583  ;;  %1595 = vpow2.f32 %v783_v10  ;;  %v604_v17 = vpop.f32.mrb[20].mxu0 }
 0x1fe   : > { %v644_v18 = vpop.f32.mrb[4].mxu1  ;;  %1597 = vpow2.f32 %v813_v11  ;;  %v785_v19 = vmul.f32 1.442695, %v604_v17  ;;  %892 = vadd.xlane.f32.xlu1 %v891_v15  ;;  %v606_v20 = vpop.f32.mrb[21].mxu0  ;;  %v894_v22 = vadd.f32 %v1584_v16, %v1582_v14 }
 0x1ff   : > { %v646_v21 = vpop.f32.mrb[5].mxu1  ;;  %1599 = vpow2.f32 %v815_v13  ;;  %v787_v23 = vmul.f32 1.442695, %v606_v20  ;;  %v608_v24 = vpop.f32.mrb[22].mxu0  ;;  %v817_v28 = vmul.f32 1.442695, %v644_v18 }
 0x200   : > { %v648_v25 = vpop.f32.mrb[6].mxu1  ;;  %1601 = vpow2.f32 %v785_v19  ;;  %v789_v26 = vmul.f32 1.442695, %v608_v24  ;;  %v610_v27 = vpop.f32.mrb[23].mxu0  ;;  %v819_v31 = vmul.f32 1.442695, %v646_v21 }
 0x201   : > { %v650_v29 = vpop.f32.mrb[7].mxu1  ;;  %1603 = vpow2.f32 %v787_v23  ;;  %v791_v30 = vmul.f32 1.442695, %v610_v27  ;;  %v821_v33 = vmul.f32 1.442695, %v648_v25 }
 0x202   : > { %v1586_v32 = vpop.eup %1585  ;;  %1605 = vpow2.f32 %v789_v26  ;;  %895 = vadd.xlane.f32.xlu1 %v894_v22  ;;  %v823_v35 = vmul.f32 1.442695, %v650_v29 }
 0x203   : > { %v1588_v34 = vpop.eup %1587  ;;  %1607 = vpow2.f32 %v791_v30 }
 0x204   : > { %v1590_v36 = vpop.eup %1589  ;;  %1609 = vpow2.f32 %v817_v28  ;;  %v897_v37 = vadd.f32 %v1588_v34, %v1586_v32 }
 0x205   : > { %v1592_v38 = vpop.eup %1591  ;;  %1611 = vpow2.f32 %v819_v31  ;;  %v614_v39 = vpop.f32.mrb[24].mxu0 }
 0x206   : > { %v654_v40 = vpop.f32.mrb[8].mxu1  ;;  %v1594_v41 = vpop.eup %1593  ;;  %1613 = vpow2.f32 %v821_v33  ;;  %v793_v42 = vmul.f32 1.442695, %v614_v39  ;;  %898 = vadd.xlane.f32.xlu1 %v897_v37 }
 0x207   : > { %v616_v43 = vpop.f32.mrb[25].mxu0  ;;  %v656_v44 = vpop.f32.mrb[9].mxu1  ;;  %1615 = vpow2.f32 %v823_v35  ;;  %v921_v48 = vadd.f32 %v1594_v41, %v1590_v36  ;;  %v825_v54 = vmul.f32 1.442695, %v654_v40 }
 0x208   : > { %v1596_v45 = vpop.eup %1595  ;;  %v795_v46 = vmul.f32 1.442695, %v616_v43  ;;  %v618_v47 = vpop.f32.mrb[26].mxu0  ;;  %1617 = vpow2.f32 %v793_v42  ;;  %v827_v58 = vmul.f32 1.442695, %v656_v44 }
 0x209   : > { %v658_v49 = vpop.f32.mrb[10].mxu1  ;;  %v1598_v50 = vpop.eup %1597  ;;  %v797_v51 = vmul.f32 1.442695, %v618_v47  ;;  %v900_v53 = vadd.f32 %v1596_v45, %v1592_v38 }
 0x20a   : > { %v620_v52 = vpop.f32.mrb[27].mxu0  ;;  %v660_v55 = vpop.f32.mrb[11].mxu1  ;;  %1619 = vpow2.f32 %v795_v46  ;;  %922 = vadd.xlane.f32.xlu1 %v921_v48  ;;  %v829_v60 = vmul.f32 1.442695, %v658_v49 }
 0x20b   : > { %v1600_v56 = vpop.eup %1599  ;;  %v799_v57 = vmul.f32 1.442695, %v620_v52  ;;  %1621 = vpow2.f32 %v797_v51  ;;  %901 = vadd.xlane.f32.xlu0 %v900_v53  ;;  %v831_v63 = vmul.f32 1.442695, %v660_v55 }
 0x20c   : > { %v1602_v59 = vpop.eup %1601  ;;  %v924_v61 = vadd.f32 %v1600_v56, %v1598_v50 }
 0x20d   : > { %v1604_v62 = vpop.eup %1603  ;;  %1623 = vpow2.f32 %v799_v57  ;;  %v624_v4 = vpop.f32.mrb[28].mxu0 }
 0x20e   : > { %v1606_v1 = vpop.eup %1605  ;;  %1625 = vpow2.f32 %v825_v54  ;;  %v903_v2 = vadd.f32 %v1604_v62, %v1602_v59  ;;  %v664_v5 = vpop.f32.mrb[12].mxu1  ;;  %v801_v7 = vmul.f32 1.442695, %v624_v4  ;;  %925 = vadd.xlane.f32.xlu1 %v924_v61 }
 0x20f   : > { %v1608_v3 = vpop.eup %1607  ;;  %1627 = vpow2.f32 %v827_v58  ;;  %v626_v8 = vpop.f32.mrb[29].mxu0  ;;  %v833_v17 = vmul.f32 1.442695, %v664_v5 }
 0x210   : > { %v1610_v6 = vpop.eup %1609  ;;  %1629 = vpow2.f32 %v829_v60  ;;  %v666_v9 = vpop.f32.mrb[13].mxu1  ;;  %v906_v10 = vadd.f32 %v1608_v3, %v1606_v1  ;;  %v803_v11 = vmul.f32 1.442695, %v626_v8 }
 0x211   : > { %v1612_v0 = vpop.eup %1611  ;;  %1631 = vpow2.f32 %v831_v63  ;;  %v628_v12 = vpop.f32.mrb[30].mxu0  ;;  %v835_v22 = vmul.f32 1.442695, %v666_v9 }
 0x212   : > { %v668_v13 = vpop.f32.mrb[14].mxu1  ;;  %v1614_v14 = vpop.eup %1613  ;;  %1633 = vpow2.f32 %v801_v7  ;;  %v805_v15 = vmul.f32 1.442695, %v628_v12  ;;  %v2172_v19 = vadd.f32 %v1612_v0, %v1610_v6  ;;  %904 = vadd.xlane.f32.xlu1 %v903_v2 }
 0x213   : > { %v630_v16 = vpop.f32.mrb[31].mxu0  ;;  %v670_v18 = vpop.f32.mrb[15].mxu1  ;;  %1635 = vpow2.f32 %v803_v11  ;;  %v837_v24 = vmul.f32 1.442695, %v668_v13 }
 0x214   : > { %v1616_v20 = vpop.eup %1615  ;;  %v807_v21 = vmul.f32 1.442695, %v630_v16  ;;  %1637 = vpow2.f32 %v805_v15  ;;  %v839_v27 = vmul.f32 1.442695, %v670_v18 }
 0x215   : > { %v1618_v23 = vpop.eup %1617  ;;  %v2174_v25 = vadd.f32 %v1616_v20, %v1614_v14  ;;  %v674_v31 = vpop.f32.mrb[16].mxu1 }
 0x216   : > { %v1620_v26 = vpop.eup %1619  ;;  %1639 = vpow2.f32 %v807_v21  ;;  %907 = vadd.xlane.f32.xlu1 %v906_v10  ;;  %v841_v33 = vmul.f32 1.442695, %v674_v31  ;;  %v676_v34 = vpop.f32.mrb[17].mxu1 }
 0x217   : > { %v1622_v28 = vpop.eup %1621  ;;  %1641 = vpow2.f32 %v833_v17  ;;  %v909_v29 = vadd.f32 %v1620_v26, %v1618_v23  ;;  %v843_v37 = vmul.f32 1.442695, %v676_v34  ;;  %v678_v38 = vpop.f32.mrb[18].mxu1 }
 0x218   : > { %v1624_v30 = vpop.eup %1623  ;;  %1643 = vpow2.f32 %v835_v22  ;;  %v845_v40 = vmul.f32 1.442695, %v678_v38  ;;  %v680_v42 = vpop.f32.mrb[19].mxu1 }
 0x219   : > { %v1626_v32 = vpop.eup %1625  ;;  %1645 = vpow2.f32 %v837_v24  ;;  %v912_v35 = vadd.f32 %v1624_v30, %v1622_v28  ;;  %v847_v44 = vmul.f32 1.442695, %v680_v42 }
 0x21a   : > { %v1628_v36 = vpop.eup %1627  ;;  %1647 = vpow2.f32 %v839_v27  ;;  %910 = vadd.xlane.f32.xlu1 %v909_v29 }
 0x21b   : > { %v1630_v39 = vpop.eup %1629  ;;  %1649 = vpow2.f32 %v841_v33  ;;  %v933_v41 = vadd.f32 %v1628_v36, %v1626_v32  ;;  %v2183_v32 = vld [vmem:[%s239_s24] sm:$0xff]  ;;  %v2188_v36 = vld [vmem:[%s248_s8] sm:$0xff] }
 0x21c   : > { %v1632_v43 = vpop.eup %1631  ;;  %1651 = vpow2.f32 %v843_v37  ;;  %v1039_v33 = vand.u32 2147483647, %v2183_v32 }
 0x21d   : > { %v1634_v45 = vpop.eup %1633  ;;  %1653 = vpow2.f32 %v845_v40  ;;  %934 = vadd.xlane.f32.xlu0 %v933_v41  ;;  %v2176_v46 = vadd.f32 %v1632_v43, %v1630_v39  ;;  %v684_v51 = vpop.f32.mrb[20].mxu1  ;;  %v1068_v39 = vand.u32 2147483647, %v2188_v36 }
 0x21e   : > { %v1636_v47 = vpop.eup %1635  ;;  %1655 = vpow2.f32 %v847_v44  ;;  %913 = vadd.xlane.f32.xlu1 %v912_v35  ;;  %v849_v53 = vmul.f32 1.442695, %v684_v51  ;;  %v686_v54 = vpop.f32.mrb[21].mxu1  ;;  %v1041_v38 = vcombine.high %v1039_v33, %v1039_v33  ;;  %v1043_v41 = vsel %vm310_vm0, %v1039_v33, 0.0 }
 0x21f   : > { %v1638_v48 = vpop.eup %1637  ;;  %v915_v49 = vadd.f32 %v1636_v47, %v1634_v45  ;;  %v851_v57 = vmul.f32 1.442695, %v686_v54  ;;  %v688_v58 = vpop.f32.mrb[22].mxu1  ;;  %v1070_v43 = vcombine.high %v1068_v39, %v1068_v39  ;;  %v1044_v44 = vrot.slane %v1043_v41, 4 }
 0x220   : > { %v1640_v50 = vpop.eup %1639  ;;  %1657 = vpow2.f32 %v849_v53  ;;  %v853_v60 = vmul.f32 1.442695, %v688_v58  ;;  %v690_v62 = vpop.f32.mrb[23].mxu1  ;;  %v1050_v42 = vsel %vm310_vm0, %v1041_v38, 0.0 }
 0x221   : > { %v1642_v52 = vpop.eup %1641  ;;  %v918_v55 = vadd.f32 %v1640_v50, %v1638_v48  ;;  %1659 = vpow2.f32 %v851_v57  ;;  %v855_v1 = vmul.f32 1.442695, %v690_v62  ;;  %v1051_v45 = vrot.slane %v1050_v42, 4 }
 0x222   : > { %v1644_v56 = vpop.eup %1643  ;;  %916 = vadd.xlane.f32.xlu1 %v915_v49  ;;  %1661 = vpow2.f32 %v853_v60  ;;  %v1079_v47 = vsel %vm310_vm0, %v1070_v43, 0.0  ;;  %v1045_v49 = vadd.f32 %v1044_v44, %v1043_v41 }
 0x223   : > { %v1646_v59 = vpop.eup %1645  ;;  %v939_v61 = vadd.f32 %v1644_v56, %v1642_v52  ;;  %1663 = vpow2.f32 %v855_v1  ;;  %v1052_v50 = vadd.f32 %v1051_v45, %v1050_v42  ;;  %v1080_v52 = vrot.slane %v1079_v47, 4  ;;  %v713_v45 = vld [vmem:[#allocation3] sm:$0xff] }
 0x224   : > { %v1648_v63 = vpop.eup %1647  ;;  %v1046_v56 = vrot.slane %v1045_v49, 2 }
 0x225   : > { %v1650_v2 = vpop.eup %1649  ;;  %940 = vadd.xlane.f32.xlu0 %v939_v61  ;;  %v942_v3 = vadd.f32 %v1648_v63, %v1646_v59  ;;  %v694_v8 = vpop.f32.mrb[24].mxu1  ;;  %v1053_v57 = vrot.slane %v1052_v50, 2  ;;  %v1081_v60 = vadd.f32 %v1080_v52, %v1079_v47 }
 0x226   : > { %v1652_v4 = vpop.eup %1651  ;;  %919 = vadd.xlane.f32.xlu1 %v918_v55  ;;  %v857_v9 = vmul.f32 1.442695, %v694_v8  ;;  %v696_v10 = vpop.f32.mrb[25].mxu1  ;;  %v1047_v62 = vadd.f32 %v1046_v56, %v1045_v49 }
 0x227   : > { %v1654_v5 = vpop.eup %1653  ;;  %v945_v6 = vadd.f32 %v1652_v4, %v1650_v2  ;;  %v859_v11 = vmul.f32 1.442695, %v696_v10  ;;  %v698_v12 = vpop.f32.mrb[26].mxu1  ;;  %v1054_v63 = vadd.f32 %v1053_v57, %v1052_v50  ;;  %v1082_v2 = vrot.slane %v1081_v60, 2  ;;  %v717_v57 = vld [vmem:[#allocation3 + $0x20] sm:$0xff] }
 0x228   : > { %v1656_v7 = vpop.eup %1655  ;;  %1665 = vpow2.f32 %v857_v9  ;;  %v861_v13 = vmul.f32 1.442695, %v698_v12  ;;  %v700_v14 = vpop.f32.mrb[27].mxu1 }
 0x229   : > { %946 = vadd.xlane.f32.xlu0 %v945_v6  ;;  %v948_v0 = vadd.f32 %v1656_v7, %v1654_v5  ;;  %1667 = vpow2.f32 %v859_v11  ;;  %v863_v15 = vmul.f32 1.442695, %v700_v14  ;;  %v1055_v4 = vrot.slane %v1054_v63, 1 }
 0x22a   : > { %v1658_v16 = vpop.eup %1657  ;;  %928 = vadd.xlane.f32.xlu1 %v2172_v19  ;;  %1669 = vpow2.f32 %v861_v13  ;;  %v1083_v6 = vadd.f32 %v1082_v2, %v1081_v60  ;;  %v718_v60 = vld [vmem:[#allocation3 + $0x28] sm:$0xff] }
 0x22b   : > { %v1660_v17 = vpop.eup %1659  ;;  %1671 = vpow2.f32 %v863_v15  ;;  %v1056_v8 = vadd.f32 %v1055_v4, %v1054_v63  ;;  %v719_v63 = vld [vmem:[#allocation3 + $0x30] sm:$0xff] }
 0x22c   : > { %v1662_v18 = vpop.eup %1661  ;;  %v951_v20 = vadd.f32 %v1660_v17, %v1658_v16  ;;  %v1084_v10 = vrot.slane %v1083_v6, 1 }
 0x22d   : > { %v1664_v21 = vpop.eup %1663  ;;  %v704_v22 = vpop.f32.mrb[28].mxu1  ;;  %v1058_v11 = vmax.f32 %v1056_v8, 1e-12 }
 0x22e   : > { %931 = vadd.xlane.f32.xlu1 %v2174_v25  ;;  %v865_v23 = vmul.f32 1.442695, %v704_v22  ;;  %v706_v24 = vpop.f32.mrb[29].mxu1  ;;  %952 = vadd.xlane.f32.xlu0 %v951_v20  ;;  %v954_v26 = vadd.f32 %v1664_v21, %v1662_v18  ;;  %v1085_v13 = vadd.f32 %v1084_v10, %v1083_v6  ;;  %v721_v6 = vld [vmem:[#allocation3 + $0x40] sm:$0xff] }
 0x22f   : > { %v867_v27 = vmul.f32 1.442695, %v706_v24  ;;  %v708_v28 = vpop.f32.mrb[30].mxu1  ;;  %v729_v10 = vld [vmem:[#allocation3 + $0x80] sm:$0xff] }
 0x230   : > { %1673 = vpow2.f32 %v865_v23  ;;  %v869_v29 = vmul.f32 1.442695, %v708_v28  ;;  %v710_v19 = vpop.f32.mrb[31].mxu1  ;;  %v1087_v15 = vmax.f32 %v1085_v13, 1e-12 }
 0x231   : > { %1675 = vpow2.f32 %v867_v27  ;;  %v871_v30 = vmul.f32 1.442695, %v710_v19 }
 0x232   : > { %v1666_v31 = vpop.eup %1665  ;;  %937 = vadd.xlane.f32.xlu1 %v2176_v46  ;;  %1677 = vpow2.f32 %v869_v29  ;;  %v1072_v46 = vsel %vm310_vm0, %v1068_v39, 0.0 }
 0x233   : > { %v1668_v25 = vpop.eup %1667  ;;  %1679 = vpow2.f32 %v871_v30  ;;  %v1073_v51 = vrot.slane %v1072_v46, 4 }
 0x234   : > { %v1670_v34 = vpop.eup %1669  ;;  %v957_v35 = vadd.f32 %v1668_v25, %v1666_v31 }
 0x235   : > { %v1672_v37 = vpop.eup %1671  ;;  %v1074_v58 = vadd.f32 %v1073_v51, %v1072_v46  ;;  %v715_v51 = vld [vmem:[#allocation3 + $0x10] sm:$0xff] }
 0x236   : > { %943 = vadd.xlane.f32.xlu1 %v942_v3  ;;  %958 = vadd.xlane.f32.xlu0 %v957_v35  ;;  %v960_v40 = vadd.f32 %v1672_v37, %v1670_v34  ;;  %v1048_v3 = vrot.slane %v1047_v62, 1 }
 0x237   : > { %v1075_v1 = vrot.slane %v1074_v58, 2 }
 0x238   : > { %v1049_v7 = vadd.f32 %v1048_v3, %v1047_v62  ;;  %v720_v3 = vld [vmem:[#allocation3 + $0x38] sm:$0xff] }
 0x239   : > { %v1076_v5 = vadd.f32 %v1075_v1, %v1074_v58 }
 0x23a   : > { %v1674_v48 = vpop.eup %1673  ;;  %949 = vadd.xlane.f32.xlu1 %v948_v0  ;;  %v1057_v0 = vmax.f32 %v1049_v7, 1e-12 }
 0x23b   : > { %v1676_v53 = vpop.eup %1675  ;;  %v1077_v9 = vrot.slane %v1076_v5, 1 }
 0x23c   : > { %v1678_v54 = vpop.eup %1677  ;;  %v963_v55 = vadd.f32 %v1676_v53, %v1674_v48  ;;  %1681 = vrcp.f32 %v1057_v0  ;;  %v714_v48 = vld [vmem:[#allocation3 + $0x8] sm:$0xff] }
 0x23d   : > { %v1680_v59 = vpop.eup %1679  ;;  %v1078_v12 = vadd.f32 %v1077_v9, %v1076_v5  ;;  %1683 = vrcp.f32 %v1058_v11  ;;  %v722_v9 = vld [vmem:[#allocation3 + $0x48] sm:$0xff] }
 0x23e   : > { %955 = vadd.xlane.f32.xlu1 %v954_v26  ;;  %964 = vadd.xlane.f32.xlu0 %v963_v55  ;;  %v966_v61 = vadd.f32 %v1680_v59, %v1678_v54  ;;  %v716_v54 = vld [vmem:[#allocation3 + $0x18] sm:$0xff] }
 0x23f   : > { %v1086_v14 = vmax.f32 %v1078_v12, 1e-12 }
 0x241   : > { %1685 = vrcp.f32 %v1086_v14 }
 0x242   : > { %961 = vadd.xlane.f32.xlu1 %v960_v40  ;;  %1687 = vrcp.f32 %v1087_v15 }
 0x246   : > { %967 = vadd.xlane.f32.xlu1 %v966_v61  ;;  %v1682_v16 = vpop.eup %1681 }
 0x247   : > { %v1684_v17 = vpop.eup %1683  ;;  %v1061_v18 = vmul.f32 14.285714, %v1682_v16 }
 0x248   : > { %v1062_v21 = vmul.f32 14.285714, %v1684_v17  ;;  %v730_v17 = vld [vmem:[#allocation3 + $0x88] sm:$0xff] }
 0x24a   : > { %v1065_v23 = vcombine.low %v1061_v18, %v1062_v21 }
 0x24b   : > { %v1686_v20 = vpop.eup %1685 }
 0x24c   : > { %v1688_v22 = vpop.eup %1687  ;;  %v1067_v26 = vmul.f32 %v1065_v23, %v2183_v32  ;;  %v723_v23 = vld [vmem:[#allocation3 + $0x50] sm:$0xff] }
 0x24d   : > { %v1092_v24 = vcombine.low %v1686_v20, %v1688_v22 }
 0x24f   : > { %v1094_v27 = vmul.f32 %v1092_v24, %v2188_v36 }
 0x251   : > { %v1095_v28 = vmul.f32 %v1094_v27, %v1067_v26 }
 0x253   : > { %v1097_v29 = vcombine.high %v1095_v28, %v1095_v28  ;;  %v1099_v19 = vsel %vm310_vm0, %v1095_v28, 0.0 }
 0x254   : > { %v1100_v30 = vrot.slane %v1099_v19, 4 }
 0x255   : > { %v1106_v31 = vsel %vm310_vm0, %v1097_v29, 0.0  ;;  %v724_v29 = vld [vmem:[#allocation3 + $0x58] sm:$0xff] }
 0x256   : > { %v1101_v25 = vadd.f32 %v1100_v30, %v1099_v19  ;;  %v1107_v33 = vrot.slane %v1106_v31, 4 }
 0x258   : > { %v1102_v34 = vrot.slane %v1101_v25, 2  ;;  %v1108_v35 = vadd.f32 %v1107_v33, %v1106_v31 }
 0x25a   : > { %v1103_v37 = vadd.f32 %v1102_v34, %v1101_v25  ;;  %v1109_v38 = vrot.slane %v1108_v35, 2 }
 0x25c   : > { %v1104_v39 = vrot.slane %v1103_v37, 1  ;;  %v1110_v40 = vadd.f32 %v1109_v38, %v1108_v35  ;;  %v725_v35 = vld [vmem:[#allocation3 + $0x60] sm:$0xff] }
 0x25e   : > { %v1105_v41 = vadd.f32 %v1104_v39, %v1103_v37  ;;  %v1111_v32 = vrot.slane %v1110_v40, 1  ;;  %v733_v37 = vld [vmem:[#allocation3 + $0xa0] sm:$0xff] }
 0x260   : > { %v1112_v42 = vadd.f32 %v1111_v32, %v1110_v40  ;;  %v1282_v36 = vsel %vm1281_vm4, %v1105_v41, 0.0 }
 0x262   : > { %v1283_v43 = vsel %vm1281_vm4, %v1112_v42, 0.0 }
 0x263   : > { %v1284_v44 = vadd.f32 %v1283_v43, %v1282_v36 }
 0x265   : > { %1285 = vadd.xlane.f32.xlu1 %v1284_v44 }
 0x273   : > { %v875_v46 = vpop.xlane.xlu1 %874 }
 0x274   : > { %v969_v47 = vadd.f32 %v875_v46, %v713_v45  ;;  %v726_v46 = vld [vmem:[#allocation3 + $0x68] sm:$0xff] }
 0x276   : > { %1002 = vst.msk [vmem:[#allocation3] sm:$0xff] %vm353_vm3, %v969_v47 }
 0x277   : > { %v878_v49 = vpop.xlane.xlu1 %877 }
 0x278   : > { %v970_v50 = vadd.f32 %v878_v49, %v714_v48 }
 0x27a   : > { %1003 = vst.msk [vmem:[#allocation3 + $0x8] sm:$0xff] %vm353_vm3, %v970_v50 }
 0x27b   : > { %v881_v52 = vpop.xlane.xlu1 %880 }
 0x27c   : > { %v971_v53 = vadd.f32 %v881_v52, %v715_v51 }
 0x27d   : > { %v1113_v13 = vld [vmem:[#allocation3] sm:$0xff] }
 0x27e   : > { %1004 = vst.msk [vmem:[#allocation3 + $0x10] sm:$0xff] %vm353_vm3, %v971_v53 }
 0x27f   : > { %v884_v55 = vpop.xlane.xlu1 %883 }
 0x280   : > { %v972_v56 = vadd.f32 %v884_v55, %v716_v54  ;;  %v727_v54 = vld [vmem:[#allocation3 + $0x70] sm:$0xff] }
 0x281   : > { %v1114_v0 = vld [vmem:[#allocation3 + $0x8] sm:$0xff] }
 0x282   : > { %1005 = vst.msk [vmem:[#allocation3 + $0x18] sm:$0xff] %vm353_vm3, %v972_v56  ;;  %1689 = vlog2.f32 %v1114_v0  ;;  %v737_v0 = vld [vmem:[#allocation3 + $0xc0] sm:$0xff] }
 0x283   : > { %v887_v58 = vpop.xlane.xlu1 %886  ;;  %1691 = vlog2.f32 %v1113_v13 }
 0x284   : > { %v973_v59 = vadd.f32 %v887_v58, %v717_v57 }
 0x285   : > { %v1115_v16 = vld [vmem:[#allocation3 + $0x10] sm:$0xff] }
 0x286   : > { %1006 = vst.msk [vmem:[#allocation3 + $0x20] sm:$0xff] %vm353_vm3, %v973_v59  ;;  %1693 = vlog2.f32 %v1115_v16  ;;  %v735_v59 = vld [vmem:[#allocation3 + $0xb0] sm:$0xff] }
 0x287   : > { %v890_v61 = vpop.xlane.xlu1 %889 }
 0x288   : > { %v974_v62 = vadd.f32 %v890_v61, %v718_v60 }
 0x289   : > { %v1116_v18 = vld [vmem:[#allocation3 + $0x18] sm:$0xff] }
 0x28a   : > { %1007 = vst.msk [vmem:[#allocation3 + $0x28] sm:$0xff] %vm353_vm3, %v974_v62  ;;  %1695 = vlog2.f32 %v1116_v18 }
 0x28b   : > { %v893_v1 = vpop.xlane.xlu1 %892 }
 0x28c   : > { %v975_v2 = vadd.f32 %v893_v1, %v719_v63  ;;  %v1690_v31 = vpop.eup %1689 }
 0x28d   : > { %v1117_v22 = vld [vmem:[#allocation3 + $0x20] sm:$0xff]  ;;  %v1692_v33 = vpop.eup %1691  ;;  %v1148_v39 = vmul.f32 0.6931472, %v1690_v31 }
 0x28e   : > { %1008 = vst.msk [vmem:[#allocation3 + $0x30] sm:$0xff] %vm353_vm3, %v975_v2  ;;  %1697 = vlog2.f32 %v1117_v22  ;;  %v1146_v43 = vmul.f32 0.6931472, %v1692_v33 }
 0x28f   : > { %v896_v4 = vpop.xlane.xlu1 %895  ;;  %v1210_v48 = vsel %vm353_vm3, %v1148_v39, 0.0 }
 0x290   : > { %v976_v5 = vadd.f32 %v896_v4, %v720_v3  ;;  %v1694_v38 = vpop.eup %1693  ;;  %v1209_v55 = vsel %vm353_vm3, %v1146_v43, 0.0 }
 0x291   : > { %v1118_v24 = vld [vmem:[#allocation3 + $0x28] sm:$0xff]  ;;  %v1150_v44 = vmul.f32 0.6931472, %v1694_v38  ;;  %v1211_v61 = vadd.f32 %v1210_v48, %v1209_v55 }
 0x292   : > { %1009 = vst.msk [vmem:[#allocation3 + $0x38] sm:$0xff] %vm353_vm3, %v976_v5  ;;  %1699 = vlog2.f32 %v1118_v24  ;;  %v731_v24 = vld [vmem:[#allocation3 + $0x90] sm:$0xff] }
 0x293   : > { %v899_v7 = vpop.xlane.xlu1 %898  ;;  %v1212_v56 = vsel %vm353_vm3, %v1150_v44, 0.0 }
 0x294   : > { %v977_v8 = vadd.f32 %v899_v7, %v721_v6  ;;  %v1696_v32 = vpop.eup %1695  ;;  %v1213_v4 = vadd.f32 %v1212_v56, %v1211_v61 }
 0x295   : > { %v1119_v28 = vld [vmem:[#allocation3 + $0x30] sm:$0xff]  ;;  %v1152_v49 = vmul.f32 0.6931472, %v1696_v32 }
 0x296   : > { %1010 = vst.msk [vmem:[#allocation3 + $0x40] sm:$0xff] %vm353_vm3, %v977_v8  ;;  %1701 = vlog2.f32 %v1119_v28 }
 0x297   : > { %v923_v12 = vpop.xlane.xlu1 %922  ;;  %v1214_v62 = vsel %vm353_vm3, %v1152_v49, 0.0  ;;  %v734_v49 = vld [vmem:[#allocation3 + $0xa8] sm:$0xff] }
 0x298   : > { %v902_v11 = vpop.xlane.xlu0 %901  ;;  %v985_v15 = vadd.f32 %v923_v12, %v729_v10  ;;  %v1698_v47 = vpop.eup %1697  ;;  %v728_v10 = vld [vmem:[#allocation3 + $0x78] sm:$0xff]  ;;  %v1215_v12 = vadd.f32 %v1214_v62, %v1213_v4 }
 0x299   : > { %v978_v14 = vadd.f32 %v902_v11, %v722_v9  ;;  %v1120_v19 = vld [vmem:[#allocation3 + $0x38] sm:$0xff]  ;;  %v1154_v57 = vmul.f32 0.6931472, %v1698_v47 }
 0x29a   : > { %1018 = vst.msk [vmem:[#allocation3 + $0x80] sm:$0xff] %vm353_vm3, %v985_v15  ;;  %1703 = vlog2.f32 %v1120_v19 }
 0x29b   : > { %1011 = vst.msk [vmem:[#allocation3 + $0x48] sm:$0xff] %vm353_vm3, %v978_v14  ;;  %v926_v20 = vpop.xlane.xlu1 %925  ;;  %v1216_v7 = vsel %vm353_vm3, %v1154_v57, 0.0 }
 0x29c   : > { %v986_v21 = vadd.f32 %v926_v20, %v730_v17  ;;  %v1700_v52 = vpop.eup %1699  ;;  %v1217_v17 = vadd.f32 %v1216_v7, %v1215_v12 }
 0x29d   : > { %v1121_v34 = vld [vmem:[#allocation3 + $0x40] sm:$0xff]  ;;  %v1156_v63 = vmul.f32 0.6931472, %v1700_v52 }
 0x29e   : > { %1019 = vst.msk [vmem:[#allocation3 + $0x88] sm:$0xff] %vm353_vm3, %v986_v21  ;;  %1705 = vlog2.f32 %v1121_v34 }
 0x29f   : > { %v905_v26 = vpop.xlane.xlu1 %904  ;;  %v1218_v13 = vsel %vm353_vm3, %v1156_v63, 0.0 }
 0x2a0   : > { %v979_v27 = vadd.f32 %v905_v26, %v723_v23  ;;  %v1702_v60 = vpop.eup %1701 }
 0x2a1   : > { %v1158_v8 = vmul.f32 0.6931472, %v1702_v60  ;;  %v1129_v38 = vld [vmem:[#allocation3 + $0x80] sm:$0xff] }
 0x2a2   : > { %1012 = vst.msk [vmem:[#allocation3 + $0x50] sm:$0xff] %vm353_vm3, %v979_v27  ;;  %v1122_v45 = vld [vmem:[#allocation3 + $0x48] sm:$0xff]  ;;  %v1219_v27 = vadd.f32 %v1218_v13, %v1217_v17 }
 0x2a3   : > { %v908_v30 = vpop.xlane.xlu1 %907  ;;  %1707 = vlog2.f32 %v1122_v45  ;;  %v1220_v21 = vsel %vm353_vm3, %v1158_v8, 0.0  ;;  %v738_v8 = vld [vmem:[#allocation3 + $0xc8] sm:$0xff] }
 0x2a4   : > { %v980_v25 = vadd.f32 %v908_v30, %v724_v29  ;;  %v1704_v3 = vpop.eup %1703  ;;  %v1221_v30 = vadd.f32 %v1220_v21, %v1219_v27  ;;  %v743_v21 = vld [vmem:[#allocation3 + $0xf0] sm:$0xff] }
 0x2a5   : > { %v1160_v14 = vmul.f32 0.6931472, %v1704_v3 }
 0x2a6   : > { %1013 = vst.msk [vmem:[#allocation3 + $0x58] sm:$0xff] %vm353_vm3, %v980_v25  ;;  %v732_v25 = vld [vmem:[#allocation3 + $0x98] sm:$0xff] }
 0x2a7   : > { %v911_v40 = vpop.xlane.xlu1 %910  ;;  %v1222_v28 = vsel %vm353_vm3, %v1160_v14, 0.0 }
 0x2a8   : > { %v981_v42 = vadd.f32 %v911_v40, %v725_v35  ;;  %v1706_v11 = vpop.eup %1705  ;;  %v1223_v40 = vadd.f32 %v1222_v28, %v1221_v30 }
 0x2a9   : > { %v1123_v50 = vld [vmem:[#allocation3 + $0x50] sm:$0xff]  ;;  %v1162_v22 = vmul.f32 0.6931472, %v1706_v11 }
 0x2aa   : > { %v935_v41 = vpop.xlane.xlu0 %934  ;;  %1014 = vst.msk [vmem:[#allocation3 + $0x60] sm:$0xff] %vm353_vm3, %v981_v42  ;;  %1709 = vlog2.f32 %v1123_v50 }
 0x2ab   : > { %v989_v36 = vadd.f32 %v935_v41, %v733_v37  ;;  %v914_v51 = vpop.xlane.xlu1 %913  ;;  %v1224_v33 = vsel %vm353_vm3, %v1162_v22, 0.0  ;;  %v739_v37 = vld [vmem:[#allocation3 + $0xd0] sm:$0xff]  ;;  %v1130_v41 = vld [vmem:[#allocation3 + $0x88] sm:$0xff] }
 0x2ac   : > { %v982_v53 = vadd.f32 %v914_v51, %v726_v46  ;;  %v1225_v44 = vadd.f32 %v1224_v33, %v1223_v40 }
 0x2ad   : > { %1022 = vst.msk [vmem:[#allocation3 + $0xa0] sm:$0xff] %vm353_vm3, %v989_v36  ;;  %v1124_v58 = vld [vmem:[#allocation3 + $0x58] sm:$0xff]  ;;  %v1708_v26 = vpop.eup %1707 }
 0x2ae   : > { %1015 = vst.msk [vmem:[#allocation3 + $0x68] sm:$0xff] %vm353_vm3, %v982_v53  ;;  %1711 = vlog2.f32 %v1124_v58  ;;  %v1164_v34 = vmul.f32 0.6931472, %v1708_v26  ;;  %v736_v58 = vld [vmem:[#allocation3 + $0xb8] sm:$0xff] }
 0x2af   : > { %v917_v1 = vpop.xlane.xlu1 %916 }
 0x2b0   : > { %v983_v5 = vadd.f32 %v917_v1, %v727_v54  ;;  %v1226_v47 = vsel %vm353_vm3, %v1164_v34, 0.0 }
 0x2b1   : > { %v1125_v9 = vld [vmem:[#allocation3 + $0x60] sm:$0xff]  ;;  %v1227_v57 = vadd.f32 %v1226_v47, %v1225_v44 }
 0x2b2   : > { %v941_v2 = vpop.xlane.xlu0 %940  ;;  %1713 = vlog2.f32 %v1125_v9  ;;  %1016 = vst.msk [vmem:[#allocation3 + $0x70] sm:$0xff] %vm353_vm3, %v983_v5 }
 0x2b3   : > { %v991_v6 = vadd.f32 %v941_v2, %v735_v59  ;;  %v920_v15 = vpop.xlane.xlu1 %919  ;;  %v741_v59 = vld [vmem:[#allocation3 + $0xe0] sm:$0xff] }
 0x2b4   : > { %v984_v18 = vadd.f32 %v920_v15, %v728_v10  ;;  %v1710_v19 = vpop.eup %1709  ;;  %v1133_v56 = vld [vmem:[#allocation3 + $0xa0] sm:$0xff] }
 0x2b5   : > { %1024 = vst.msk [vmem:[#allocation3 + $0xb0] sm:$0xff] %vm353_vm3, %v991_v6  ;;  %v1126_v23 = vld [vmem:[#allocation3 + $0x68] sm:$0xff]  ;;  %v1166_v32 = vmul.f32 0.6931472, %v1710_v19 }
 0x2b6   : > { %v947_v16 = vpop.xlane.xlu0 %946  ;;  %1715 = vlog2.f32 %v1126_v23  ;;  %1017 = vst.msk [vmem:[#allocation3 + $0x78] sm:$0xff] %vm353_vm3, %v984_v18 }
 0x2b7   : > { %v993_v20 = vadd.f32 %v947_v16, %v737_v0  ;;  %v929_v29 = vpop.xlane.xlu1 %928  ;;  %v1228_v53 = vsel %vm353_vm3, %v1166_v32, 0.0 }
 0x2b8   : > { %v987_v31 = vadd.f32 %v929_v29, %v731_v24  ;;  %v1712_v39 = vpop.eup %1711  ;;  %v1229_v63 = vadd.f32 %v1228_v53, %v1227_v57 }
 0x2b9   : > { %1026 = vst.msk [vmem:[#allocation3 + $0xc0] sm:$0xff] %vm353_vm3, %v993_v20  ;;  %v1127_v35 = vld [vmem:[#allocation3 + $0x70] sm:$0xff]  ;;  %v1168_v48 = vmul.f32 0.6931472, %v1712_v39  ;;  %v740_v20 = vld [vmem:[#allocation3 + $0xd8] sm:$0xff] }
 0x2ba   : > { %1717 = vlog2.f32 %v1127_v35  ;;  %1020 = vst.msk [vmem:[#allocation3 + $0x90] sm:$0xff] %vm353_vm3, %v987_v31 }
 0x2bb   : > { %v932_v42 = vpop.xlane.xlu1 %931  ;;  %v953_v36 = vpop.xlane.xlu0 %952  ;;  %1719 = vlog2.f32 %v1129_v38  ;;  %v1230_v62 = vsel %vm353_vm3, %v1168_v48, 0.0  ;;  %v742_v38 = vld [vmem:[#allocation3 + $0xe8] sm:$0xff]  ;;  %v744_v48 = vld [vmem:[#allocation3 + $0xf8] sm:$0xff] }
 0x2bc   : > { %v1714_v43 = vpop.eup %1713  ;;  %v988_v45 = vadd.f32 %v932_v42, %v732_v25  ;;  %v995_v46 = vadd.f32 %v953_v36, %v739_v37  ;;  %1721 = vlog2.f32 %v1130_v41  ;;  %v1231_v7 = vadd.f32 %v1230_v62, %v1229_v63  ;;  %v1135_v10 = vld [vmem:[#allocation3 + $0xb0] sm:$0xff] }
 0x2bd   : > { %v1128_v50 = vld [vmem:[#allocation3 + $0x78] sm:$0xff]  ;;  %v1170_v52 = vmul.f32 0.6931472, %v1714_v43 }
 0x2be   : > { %1021 = vst.msk [vmem:[#allocation3 + $0x98] sm:$0xff] %vm353_vm3, %v988_v45  ;;  %1028 = vst.msk [vmem:[#allocation3 + $0xd0] sm:$0xff] %vm353_vm3, %v995_v46  ;;  %1723 = vlog2.f32 %v1128_v50 }
 0x2bf   : > { %v938_v51 = vpop.xlane.xlu1 %937  ;;  %v1232_v3 = vsel %vm353_vm3, %v1170_v52, 0.0 }
 0x2c0   : > { %v1716_v54 = vpop.eup %1715  ;;  %v990_v55 = vadd.f32 %v938_v51, %v734_v49  ;;  %v1233_v13 = vadd.f32 %v1232_v3, %v1231_v7  ;;  %v1137_v24 = vld [vmem:[#allocation3 + $0xc0] sm:$0xff] }
 0x2c1   : > { %v1131_v60 = vld [vmem:[#allocation3 + $0x90] sm:$0xff]  ;;  %v1172_v61 = vmul.f32 0.6931472, %v1716_v54 }
 0x2c2   : > { %1023 = vst.msk [vmem:[#allocation3 + $0xa8] sm:$0xff] %vm353_vm3, %v990_v55  ;;  %1725 = vlog2.f32 %v1131_v60 }
 0x2c3   : > { %v944_v1 = vpop.xlane.xlu1 %943  ;;  %v959_v2 = vpop.xlane.xlu0 %958  ;;  %1727 = vlog2.f32 %v1133_v56  ;;  %v1234_v11 = vsel %vm353_vm3, %v1172_v61, 0.0 }
 0x2c4   : > { %v1718_v4 = vpop.eup %1717  ;;  %v992_v5 = vadd.f32 %v944_v1, %v736_v58  ;;  %v997_v6 = vadd.f32 %v959_v2, %v741_v59  ;;  %v1235_v22 = vadd.f32 %v1234_v11, %v1233_v13 }
 0x2c5   : > { %v1132_v9 = vld [vmem:[#allocation3 + $0x98] sm:$0xff]  ;;  %v1174_v0 = vmul.f32 0.6931472, %v1718_v4  ;;  %v1720_v12 = vpop.eup %1719  ;;  %v1139_v40 = vld [vmem:[#allocation3 + $0xd0] sm:$0xff] }
 0x2c6   : > { %1025 = vst.msk [vmem:[#allocation3 + $0xb8] sm:$0xff] %vm353_vm3, %v992_v5  ;;  %1030 = vst.msk [vmem:[#allocation3 + $0xe0] sm:$0xff] %vm353_vm3, %v997_v6  ;;  %1729 = vlog2.f32 %v1132_v9  ;;  %v1722_v14 = vpop.eup %1721  ;;  %v1178_v27 = vmul.f32 0.6931472, %v1720_v12 }
 0x2c7   : > { %v950_v15 = vpop.xlane.xlu1 %949  ;;  %v1236_v16 = vsel %vm353_vm3, %v1174_v0, 0.0  ;;  %1731 = vlog2.f32 %v1135_v10  ;;  %v1180_v30 = vmul.f32 0.6931472, %v1722_v14 }
 0x2c8   : > { %v1724_v17 = vpop.eup %1723  ;;  %v994_v18 = vadd.f32 %v950_v15, %v738_v8  ;;  %v1237_v28 = vadd.f32 %v1236_v16, %v1235_v22  ;;  %v1240_v32 = vsel %vm353_vm3, %v1178_v27, 0.0 }
 0x2c9   : > { %v1134_v23 = vld [vmem:[#allocation3 + $0xa8] sm:$0xff]  ;;  %v1176_v26 = vmul.f32 0.6931472, %v1724_v17  ;;  %v1242_v43 = vsel %vm353_vm3, %v1180_v30, 0.0 }
 0x2ca   : > { %1027 = vst.msk [vmem:[#allocation3 + $0xc8] sm:$0xff] %vm353_vm3, %v994_v18  ;;  %1733 = vlog2.f32 %v1134_v23 }
 0x2cb   : > { %v956_v29 = vpop.xlane.xlu1 %955  ;;  %v965_v19 = vpop.xlane.xlu0 %964  ;;  %v1238_v31 = vsel %vm353_vm3, %v1176_v26, 0.0  ;;  %1735 = vlog2.f32 %v1137_v24 }
 0x2cc   : > { %v1726_v25 = vpop.eup %1725  ;;  %v996_v33 = vadd.f32 %v956_v29, %v740_v20  ;;  %v999_v34 = vadd.f32 %v965_v19, %v743_v21  ;;  %v1239_v35 = vadd.f32 %v1238_v31, %v1237_v28 }
 0x2cd   : > { %v1728_v37 = vpop.eup %1727  ;;  %v1136_v39 = vld [vmem:[#allocation3 + $0xb8] sm:$0xff]  ;;  %v1182_v41 = vmul.f32 0.6931472, %v1726_v25  ;;  %v1141_v50 = vld [vmem:[#allocation3 + $0xe0] sm:$0xff] }
 0x2ce   : > { %1029 = vst.msk [vmem:[#allocation3 + $0xd8] sm:$0xff] %vm353_vm3, %v996_v33  ;;  %1032 = vst.msk [vmem:[#allocation3 + $0xf0] sm:$0xff] %vm353_vm3, %v999_v34  ;;  %1737 = vlog2.f32 %v1136_v39  ;;  %v1241_v42 = vadd.f32 %v1240_v32, %v1239_v35  ;;  %v1186_v46 = vmul.f32 0.6931472, %v1728_v37 }
 0x2cf   : > { %v962_v36 = vpop.xlane.xlu1 %961  ;;  %1739 = vlog2.f32 %v1139_v40  ;;  %v1244_v52 = vsel %vm353_vm3, %v1182_v41, 0.0 }
 0x2d0   : > { %v1730_v44 = vpop.eup %1729  ;;  %v998_v45 = vadd.f32 %v962_v36, %v742_v38  ;;  %v1243_v47 = vadd.f32 %v1242_v43, %v1241_v42  ;;  %v1248_v60 = vsel %vm353_vm3, %v1186_v46, 0.0 }
 0x2d1   : > { %v1138_v49 = vld [vmem:[#allocation3 + $0xc8] sm:$0xff]  ;;  %v1184_v51 = vmul.f32 0.6931472, %v1730_v44  ;;  %v1732_v53 = vpop.eup %1731 }
 0x2d2   : > { %1031 = vst.msk [vmem:[#allocation3 + $0xe8] sm:$0xff] %vm353_vm3, %v998_v45  ;;  %1741 = vlog2.f32 %v1138_v49  ;;  %v1245_v54 = vadd.f32 %v1244_v52, %v1243_v47  ;;  %v1190_v1 = vmul.f32 0.6931472, %v1732_v53 }
 0x2d3   : > { %v968_v55 = vpop.xlane.xlu1 %967  ;;  %v1246_v56 = vsel %vm353_vm3, %v1184_v51, 0.0  ;;  %1743 = vlog2.f32 %v1141_v50 }
 0x2d4   : > { %v1734_v57 = vpop.eup %1733  ;;  %v1000_v58 = vadd.f32 %v968_v55, %v744_v48  ;;  %v1247_v59 = vadd.f32 %v1246_v56, %v1245_v54  ;;  %v1252_v10 = vsel %vm353_vm3, %v1190_v1, 0.0 }
 0x2d5   : > { %v1140_v61 = vld [vmem:[#allocation3 + $0xd8] sm:$0xff]  ;;  %v1143_v62 = vld [vmem:[#allocation3 + $0xf0] sm:$0xff]  ;;  %v1188_v63 = vmul.f32 0.6931472, %v1734_v57  ;;  %v1736_v2 = vpop.eup %1735 }
 0x2d6   : > { %1033 = vst.msk [vmem:[#allocation3 + $0xf8] sm:$0xff] %vm353_vm3, %v1000_v58  ;;  %1745 = vlog2.f32 %v1140_v61  ;;  %v1249_v3 = vadd.f32 %v1248_v60, %v1247_v59  ;;  %v1194_v9 = vmul.f32 0.6931472, %v1736_v2 }
 0x2d7   : > { %1747 = vlog2.f32 %v1143_v62  ;;  %v1250_v4 = vsel %vm353_vm3, %v1188_v63, 0.0 }
 0x2d8   : > { %v1738_v5 = vpop.eup %1737  ;;  %v1251_v6 = vadd.f32 %v1250_v4, %v1249_v3  ;;  %v1256_v18 = vsel %vm353_vm3, %v1194_v9, 0.0 }
 0x2d9   : > { %v1142_v7 = vld [vmem:[#allocation3 + $0xe8] sm:$0xff]  ;;  %v1192_v8 = vmul.f32 0.6931472, %v1738_v5  ;;  %v1740_v0 = vpop.eup %1739 }
 0x2da   : > { %1749 = vlog2.f32 %v1142_v7  ;;  %v1253_v11 = vadd.f32 %v1252_v10, %v1251_v6  ;;  %v1198_v17 = vmul.f32 0.6931472, %v1740_v0 }
 0x2db   : > { %v1254_v12 = vsel %vm353_vm3, %v1192_v8, 0.0 }
 0x2dc   : > { %v1742_v13 = vpop.eup %1741  ;;  %v1255_v14 = vadd.f32 %v1254_v12, %v1253_v11  ;;  %v1260_v29 = vsel %vm353_vm3, %v1198_v17, 0.0 }
 0x2dd   : > { %v1144_v15 = vld [vmem:[#allocation3 + $0xf8] sm:$0xff]  ;;  %v1196_v16 = vmul.f32 0.6931472, %v1742_v13  ;;  %v1744_v20 = vpop.eup %1743 }
 0x2de   : > { %1751 = vlog2.f32 %v1144_v15  ;;  %v1257_v21 = vadd.f32 %v1256_v18, %v1255_v14  ;;  %v1202_v28 = vmul.f32 0.6931472, %v1744_v20 }
 0x2df   : > { %v1258_v22 = vsel %vm353_vm3, %v1196_v16, 0.0 }
 0x2e0   : > { %v1746_v23 = vpop.eup %1745  ;;  %v1259_v24 = vadd.f32 %v1258_v22, %v1257_v21  ;;  %v1264_v35 = vsel %vm353_vm3, %v1202_v28, 0.0 }
 0x2e1   : > { %v1748_v26 = vpop.eup %1747  ;;  %v1200_v27 = vmul.f32 0.6931472, %v1746_v23 }
 0x2e2   : > { %v1261_v19 = vadd.f32 %v1260_v29, %v1259_v24  ;;  %v1206_v30 = vmul.f32 0.6931472, %v1748_v26 }
 0x2e3   : > { %v1262_v31 = vsel %vm353_vm3, %v1200_v27, 0.0 }
 0x2e4   : > { %v1750_v25 = vpop.eup %1749  ;;  %v1263_v33 = vadd.f32 %v1262_v31, %v1261_v19  ;;  %v1268_v39 = vsel %vm353_vm3, %v1206_v30, 0.0 }
 0x2e5   : > { %v1204_v34 = vmul.f32 0.6931472, %v1750_v25 }
 0x2e6   : > { %v1265_v37 = vadd.f32 %v1264_v35, %v1263_v33 }
 0x2e7   : > { %v1266_v38 = vsel %vm353_vm3, %v1204_v34, 0.0 }
 0x2e8   : > { %v1752_v40 = vpop.eup %1751  ;;  %v1267_v41 = vadd.f32 %v1266_v38, %v1265_v37 }
 0x2e9   : > { %v1208_v32 = vmul.f32 0.6931472, %v1752_v40 }
 0x2ea   : > { %v1269_v42 = vadd.f32 %v1268_v39, %v1267_v41 }
 0x2eb   : > { %v1270_v36 = vsel %vm353_vm3, %v1208_v32, 0.0 }
 0x2ec   : > { %v1271_v43 = vadd.f32 %v1270_v36, %v1269_v42 }
 0x2ee   : > { %1272 = vadd.xlane.f32.xlu0 %v1271_v43 }
 0x2f2   : > { %v1286_v44 = vpop.xlane.xlu1 %1285 }
 0x2f3   : > { %v1287_v45 = vrot.slane %v1286_v44, 4 }
 0x2f5   : > { %v1288_v46 = vadd.f32 %v1287_v45, %v1286_v44 }
 0x2f7   : > { %v1289_v47 = vrot.slane %v1288_v46, 2 }
 0x2f9   : > { %v1290_v51 = vadd.f32 %v1289_v47, %v1288_v46 }
 0x2fb   : > { %v1291_v54 = vrot.slane %v1290_v51, 1 }
 0x2fd   : > { %v1292_v57 = vadd.f32 %v1291_v54, %v1290_v51 }
 0x37b   : > { %v1273_v48 = vpop.xlane.xlu0 %1272 }
 0x37c   : > { %v1274_v49 = vrot.slane %v1273_v48, 4 }
 0x37e   : > { %v1275_v50 = vadd.f32 %v1274_v49, %v1273_v48 }
 0x380   : > { %v1276_v52 = vrot.slane %v1275_v50, 2 }
 0x382   : > { %v1277_v53 = vadd.f32 %v1276_v52, %v1275_v50 }
 0x384   : > { %v1278_v55 = vrot.slane %v1277_v53, 1 }
 0x386   : > { %v1279_v56 = vadd.f32 %v1278_v55, %v1277_v53 }
 0x388   : > { %1474 = vpush %v1279_v56 }
 0x389   : > { %1476 = vpush %v1292_v57 }
 0x3b9   : > { %s1475_s18 = spop %1474 }
 0x3ba   : > { %s1477_s22 = spop %1476 }
 0x3bb   : > { %s1294_s12 = ssub.f32 %s1475_s18, %s1477_s22 }
 0x3bd   : > { %v1295_v58 = vstv %s1294_s12 }
 0x3be   : > { %1297 = vst.msk [vmem:[%s299_s20] sm:$0x1] %vm1296_vm5, %v1295_v58 }
 0x3bf PF: > { %s19_s17 = sadd.s32 1, %s1897_s17   ;;  %s2302_s12 = smov %s1881_s13 }
 0x3c0   : > { %p16_p1 = scmp.ge.s32.totalorder %s19_s17, 4   ;;  %s2303_s13 = smov %s1885_s14 }
 0x3c1   : > { %s2304_s14 = smov %s1971_s23  ;;  %s2305_s15 = smov %s1893_s16 }
 0x3c2   : > { %s2306_s16 = smov %s2308_s19  ;;  %18 = sbr.rel (!%p16_p1) target bundleno = 6 (0x6), region = 104 }
 0x3c9   :  { %1321 = vsyncpa [#allocation6], 1 }
 0x3ca   :  { %1323 = vsyncpa [#allocation6 + $0x1], 1 }
 0x3cb   :  { %1324 = vsyncpa [#allocation8], 1 }
 0x3cc   :  { %1326 = vsyncpa [#allocation8 + $0x1], 1 }

</bundles_post_ra>
